<compile_context>
chip_gen: v6e
topology: v6e:2x2x1
jax: 0.10.0
libtpu: 0.0.40
codegen_flags: <defaults>
</compile_context>

<pallas_src>
import functools

import jax
import jax.numpy as jnp
from jax import lax
from jax.experimental import pallas as pl
from jax.experimental.pallas import tpu as pltpu

EPS = 1e-5  # nn.BatchNorm2d default eps


def _pick_tile_rows(h, w, target_rows=4096):
    """Image rows per tile: th divides h and th*w is near target_rows."""
    th = max(1, min(h, target_rows // max(w, 1)))
    while h % th:
        th -= 1
    return th


# ----------------------------------------------------------------------------
# Pallas kernels
# ----------------------------------------------------------------------------
def _conv1_kernel(p_ref, w_ref, b_ref, o_ref):
    """mlp_shared: (TILE, 9*label_nc)bf16 @ (9*label_nc, 128)bf16 + bias, ReLU."""
    acc = jnp.dot(p_ref[...], w_ref[...], preferred_element_type=jnp.float32)
    acc = acc + b_ref[...]
    o_ref[...] = jnp.maximum(acc, 0.0).astype(o_ref.dtype)


def _spade_fused_kernel(x_ref, p_ref, wgb_ref, bgb_ref, mean_ref, istd_ref,
                        o_ref, *, th, w, c):
    """Fused gamma/beta 3x3 conv + BatchNorm apply + SPADE modulation.

    x_ref:    (th*w, C)            f32   activations (this row-group)
    p_ref:    ((th+2)*w, 3*128)    bf16  kx-patches with +/-1 image-row halo
    wgb_ref:  (3, 3*128, 2*C)      bf16  gamma||beta weights, one slab per ky
    bgb_ref:  (1, 2*C)             f32   gamma||beta bias
    mean/istd:(1, C)               f32   hoisted batch-norm statistics
    """
    rows = th * w
    gb = jnp.zeros((rows, 2 * c), jnp.float32) + bgb_ref[...]
    for ky in range(3):  # unrolled: 3 aligned sublane slices + 3 MXU dots
        gb = gb + jnp.dot(p_ref[ky * w: ky * w + rows, :], wgb_ref[ky],
                          preferred_element_type=jnp.float32)
    gamma = gb[:, :c]
    beta = gb[:, c:]
    xn = (x_ref[...] - mean_ref[...]) * istd_ref[...]
    o_ref[...] = (xn * (1.0 + gamma) + beta).astype(o_ref.dtype)


# ----------------------------------------------------------------------------
# Pallas wrappers
# ----------------------------------------------------------------------------
def conv1_mlp_shared(p_seg, w1_mat, b1, *, tile_rows):
    m, k1 = p_seg.shape
    nh = w1_mat.shape[1]
    ce = pl.CostEstimate(
        flops=2 * m * k1 * nh, transcendentals=0,
        bytes_accessed=int(m * k1 * 2 + k1 * nh * 2 + nh * 4 + m * nh * 2))
    return pl.pallas_call(
        _conv1_kernel,
        out_shape=jax.ShapeDtypeStruct((m, nh), jnp.bfloat16),
        grid=(m // tile_rows,),
        in_specs=[
            pl.BlockSpec((tile_rows, k1), lambda i: (i, 0)),
            pl.BlockSpec((k1, nh), lambda i: (0, 0)),
            pl.BlockSpec((1, nh), lambda i: (0, 0)),
        ],
        out_specs=pl.BlockSpec((tile_rows, nh), lambda i: (i, 0)),
        compiler_params=pltpu.CompilerParams(
            dimension_semantics=("parallel",),
            vmem_limit_bytes=64 * 1024 * 1024),
        cost_estimate=ce,
    )(p_seg, w1_mat, b1.reshape(1, nh).astype(jnp.float32))


def spade_fused(x3, p_tiles, wgb, bgb, mean, istd, *, th, w):
    n, hw, c = x3.shape
    _, nt, prows, k3 = p_tiles.shape
    ce = pl.CostEstimate(
        flops=2 * n * hw * (3 * k3) * (2 * c),
        transcendentals=0,
        bytes_accessed=int(x3.size * 4 + p_tiles.size * 2 + wgb.size * 2
                           + bgb.size * 4 + mean.size * 4 + istd.size * 4
                           + n * hw * c * 4))
    kern = functools.partial(_spade_fused_kernel, th=th, w=w, c=c)
    return pl.pallas_call(
        kern,
        out_shape=jax.ShapeDtypeStruct((n, hw, c), jnp.float32),
        grid=(n, nt),
        in_specs=[
            pl.BlockSpec((None, th * w, c), lambda i, t: (i, t, 0)),
            pl.BlockSpec((None, None, prows, k3), lambda i, t: (i, t, 0, 0)),
            pl.BlockSpec((3, k3, 2 * c), lambda i, t: (0, 0, 0)),
            pl.BlockSpec((1, 2 * c), lambda i, t: (0, 0)),
            pl.BlockSpec((1, c), lambda i, t: (0, 0)),
            pl.BlockSpec((1, c), lambda i, t: (0, 0)),
        ],
        out_specs=pl.BlockSpec((None, th * w, c), lambda i, t: (i, t, 0)),
        compiler_params=pltpu.CompilerParams(
            dimension_semantics=("parallel", "parallel"),
            vmem_limit_bytes=64 * 1024 * 1024),
        cost_estimate=ce,
    )(x3, p_tiles, wgb, bgb, mean, istd)


# ----------------------------------------------------------------------------
# Glue (plain JAX): layout conversion, nearest resize, patch extraction
# ----------------------------------------------------------------------------
def nearest_resize_nchw(seg, out_h, out_w):
    # torch F.interpolate(mode='nearest'): src = floor(dst * in / out)
    _, _, h, w = seg.shape
    ih = (jnp.arange(out_h) * h) // out_h
    iw = (jnp.arange(out_w) * w) // out_w
    return seg[:, :, ih[:, None], iw[None, :]]


def im2col_3x3(x_nhwc):
    n, h, w, c = x_nhwc.shape
    xp = jnp.pad(x_nhwc, ((0, 0), (1, 1), (1, 1), (0, 0)))
    cols = [xp[:, ky:ky + h, kx:kx + w, :] for ky in range(3) for kx in range(3)]
    return jnp.concatenate(cols, axis=-1).reshape(n * h * w, 9 * c)


def kx_im2col(x_nhwc):
    """Width-direction (kx) taps only -> (N, H, W, 3*C); 3x instead of 9x."""
    n, h, w, c = x_nhwc.shape
    xp = jnp.pad(x_nhwc, ((0, 0), (0, 0), (1, 1), (0, 0)))
    return jnp.concatenate([xp[:, :, kx:kx + w, :] for kx in range(3)], axis=-1)


def row_halo_tiles(pkx, th):
    """(N, H, W, K) -> (N, H//th, (th+2)*W, K): per-tile row-groups with a
    +/-1 image-row halo (zero rows at the image top/bottom)."""
    n, h, w, k = pkx.shape
    nt = h // th
    padded = jnp.pad(pkx, ((0, 0), (1, 1), (0, 0), (0, 0)))
    idx = jnp.arange(nt)[:, None] * th + jnp.arange(th + 2)[None, :]
    tiles = padded[:, idx]                      # (N, nt, th+2, W, K)
    return tiles.reshape(n, nt, (th + 2) * w, k)


def conv_weight_to_matrix(w_oihw):
    # (Cout, Cin, 3, 3) -> (9*Cin, Cout) matching im2col_3x3 channel order.
    cout, cin, kh, kw = w_oihw.shape
    return jnp.transpose(w_oihw, (2, 3, 1, 0)).reshape(kh * kw * cin, cout)


def conv_weight_to_ky_slabs(w_oihw):
    # (Cout, Cin, 3, 3) -> (3, 3*Cin, Cout): one (kx, Cin)-flattened slab per ky.
    cout, cin, kh, kw = w_oihw.shape
    return jnp.transpose(w_oihw, (2, 3, 1, 0)).reshape(kh, kw * cin, cout)


def spade_forward(x_nchw, seg_nchw, params):
    """SPADE forward.  x: (N, norm_nc, H, W), seg: (N, label_nc, h, w)."""
    n, c, h, w = x_nchw.shape
    nh = params["w1"].shape[0]                 # nhidden (128)
    th = _pick_tile_rows(h, w)

    # BatchNorm2d(affine=False) batch statistics, hoisted out of the fused
    # kernel (output is only (1, C); plain XLA reduction, per review).
    mean = jnp.mean(x_nchw, axis=(0, 2, 3))
    var = jnp.mean(jnp.square(x_nchw - mean[None, :, None, None]), axis=(0, 2, 3))
    mean2 = mean.reshape(1, c).astype(jnp.float32)
    istd2 = lax.rsqrt(var + EPS).reshape(1, c).astype(jnp.float32)

    # x in channel-last layout, grouped by (image, row-group).
    x3 = jnp.transpose(x_nchw, (0, 2, 3, 1)).reshape(n, h * w, c).astype(jnp.float32)

    # segmap: nearest resize, full im2col (only 9*label_nc wide -> cheap), bf16.
    seg = nearest_resize_nchw(seg_nchw, h, w)
    seg_nhwc = jnp.transpose(seg, (0, 2, 3, 1))
    p_seg = im2col_3x3(seg_nhwc).astype(jnp.bfloat16)
    w1_mat = conv_weight_to_matrix(params["w1"]).astype(jnp.bfloat16)

    # mlp_shared conv (Pallas, row-tiled, bf16 MXU); activation stays bf16.
    actv2d = conv1_mlp_shared(p_seg, w1_mat, params["b1"], tile_rows=th * w)
    actv_nhwc = actv2d.reshape(n, h, w, nh)

    # kx-only patches + row-halo tiles; ky taps applied inside the kernel.
    pkx = kx_im2col(actv_nhwc)                     # (N, H, W, 3*nh) bf16
    p_tiles = row_halo_tiles(pkx, th)              # (N, nt, (th+2)*W, 3*nh)

    # gamma||beta fused weight / bias.
    wgb = jnp.concatenate([conv_weight_to_ky_slabs(params["wg"]),
                           conv_weight_to_ky_slabs(params["wb"])],
                          axis=-1).astype(jnp.bfloat16)        # (3, 3*nh, 2*C)
    bgb = jnp.concatenate([params["bg"], params["bb"]]).reshape(1, 2 * c)
    bgb = bgb.astype(jnp.float32)

    out3 = spade_fused(x3, p_tiles, wgb, bgb, mean2, istd2, th=th, w=w)
    return jnp.transpose(out3.reshape(n, h, w, c), (0, 3, 1, 2))


# ----------------------------------------------------------------------------
# Pure-JAX reference (sanity check)
# ----------------------------------------------------------------------------
def spade_reference(x, seg, params):
    mean = x.mean(axis=(0, 2, 3), keepdims=True)
    var = x.var(axis=(0, 2, 3), keepdims=True)     # biased, torch train mode
    normed = (x - mean) / jnp.sqrt(var + EPS)

    seg = nearest_resize_nchw(seg, x.shape[2], x.shape[3])

    def conv(inp, w, b):
        y = lax.conv_general_dilated(inp, w, (1, 1), "SAME",
                                     dimension_numbers=("NCHW", "OIHW", "NCHW"))
        return y + b[None, :, None, None]

    actv = jnp.maximum(conv(seg, params["w1"], params["b1"]), 0.0)
    gamma = conv(actv, params["wg"], params["bg"])
    beta = conv(actv, params["wb"], params["bb"])
    return normed * (1 + gamma) + beta


# ----------------------------------------------------------------------------
if __name__ == "__main__":
    norm_nc, label_nc, nhidden = 4, 4, 128
    N, H, W = 2, 16, 16
    seg_h, seg_w = 8, 8

    key = jax.random.PRNGKey(0)
    k = jax.random.split(key, 8)

    x = jax.random.normal(k[0], (N, norm_nc, H, W), jnp.float32)
    segmap = jax.random.normal(k[1], (N, label_nc, seg_h, seg_w), jnp.float32)

    params = {
        "w1": 0.05 * jax.random.normal(k[2], (nhidden, label_nc, 3, 3), jnp.float32),
        "b1": 0.05 * jax.random.normal(k[3], (nhidden,), jnp.float32),
        "wg": 0.05 * jax.random.normal(k[4], (norm_nc, nhidden, 3, 3), jnp.float32),
        "bg": 0.05 * jax.random.normal(k[5], (norm_nc,), jnp.float32),
        "wb": 0.05 * jax.random.normal(k[6], (norm_nc, nhidden, 3, 3), jnp.float32),
        "bb": 0.05 * jax.random.normal(k[7], (norm_nc,), jnp.float32),
    }

    out = jax.jit(spade_forward)(x, segmap, params)
    out = jax.block_until_ready(out)

    ref = spade_reference(x, segmap, params)
    assert out.shape == (N, norm_nc, H, W)
    err = float(jnp.max(jnp.abs(out - ref)))
    # bf16 MXU operands (patches / activations / weights) set the tolerance.
    assert jnp.allclose(out, ref, atol=2e-2, rtol=2e-2), err

    print("KERNEL_OK")
</pallas_src>

<mosaic_0001>
module attributes {stable_mosaic.version = 11 : i64} {
  func.func @_conv1_kernel(%arg0: i32, %arg1: memref<256x36xbf16, #tpu.memory_space<vmem>>, %arg2: memref<36x128xbf16, #tpu.memory_space<vmem>>, %arg3: memref<1x128xf32, #tpu.memory_space<vmem>>, %arg4: memref<256x128xbf16, #tpu.memory_space<vmem>>) attributes {dimension_semantics = [#tpu.dimension_semantics<parallel>], iteration_bounds = array<i64: 2>, scalar_prefetch = 0 : i64, scratch_operands = 0 : i64, tpu.core_type = #tpu.core_type<tc>, window_params = [{transform_indices = @transform_0, window_bounds = array<i64: 256, 36>}, {pipeline_mode = #tpu.pipeline_mode<synchronous>, transform_indices = @transform_1, window_bounds = array<i64: 36, 128>}, {pipeline_mode = #tpu.pipeline_mode<synchronous>, transform_indices = @transform_2, window_bounds = array<i64: 1, 128>}, {transform_indices = @transform_3, window_bounds = array<i64: 256, 128>}]} {
    %c0 = arith.constant 0 : index
    %c0_0 = arith.constant 0 : index
    %0 = vector.load %arg1[%c0, %c0_0] : memref<256x36xbf16, #tpu.memory_space<vmem>>, vector<256x36xbf16>
    %c0_1 = arith.constant 0 : index
    %c0_2 = arith.constant 0 : index
    %1 = vector.load %arg2[%c0_1, %c0_2] : memref<36x128xbf16, #tpu.memory_space<vmem>>, vector<36x128xbf16>
    %cst = arith.constant dense<0.000000e+00> : vector<256x128xf32>
    %2 = tpu.matmul %0, %1, %cst {dimension_numbers = #tpu.dot_dimension_numbers<[1], [0], [0], [1], [0, 0, 1, 1], [], []>} : vector<256x36xbf16>, vector<36x128xbf16>, vector<256x128xf32> -> vector<256x128xf32>
    %c0_3 = arith.constant 0 : index
    %c0_4 = arith.constant 0 : index
    %3 = vector.load %arg3[%c0_3, %c0_4] : memref<1x128xf32, #tpu.memory_space<vmem>>, vector<1x128xf32>
    %4 = vector.broadcast %3 : vector<1x128xf32> to vector<256x128xf32>
    %5 = arith.addf %2, %4 : vector<256x128xf32>
    %cst_5 = arith.constant 0.000000e+00 : f32
    %6 = vector.broadcast %cst_5 : f32 to vector<256x128xf32>
    %7 = arith.maximumf %5, %6 : vector<256x128xf32>
    %8 = arith.truncf %7 : vector<256x128xf32> to vector<256x128xbf16>
    %c0_6 = arith.constant 0 : index
    %c0_7 = arith.constant 0 : index
    %9 = vector.load %arg4[%c0_6, %c0_7] : memref<256x128xbf16, #tpu.memory_space<vmem>>, vector<256x128xbf16>
    tpu.vector_store %arg4[%c0_6, %c0_7], %8 {strides = array<i32>} : memref<256x128xbf16, #tpu.memory_space<vmem>>, vector<256x128xbf16>,
    return
  }
  func.func @transform_0(%arg0: i32) -> (i32, i32) {
    %c0_i32 = arith.constant 0 : i32
    %c0_i32_0 = arith.constant 0 : i32
    return %arg0, %c0_i32 : i32, i32
  }
  func.func @transform_1(%arg0: i32) -> (i32, i32) {
    %c0_i32 = arith.constant 0 : i32
    %c0_i32_0 = arith.constant 0 : i32
    %c0_i32_1 = arith.constant 0 : i32
    return %c0_i32, %c0_i32_0 : i32, i32
  }
  func.func @transform_2(%arg0: i32) -> (i32, i32) {
    %c0_i32 = arith.constant 0 : i32
    %c0_i32_0 = arith.constant 0 : i32
    %c0_i32_1 = arith.constant 0 : i32
    return %c0_i32, %c0_i32_0 : i32, i32
  }
  func.func @transform_3(%arg0: i32) -> (i32, i32) {
    %c0_i32 = arith.constant 0 : i32
    %c0_i32_0 = arith.constant 0 : i32
    return %arg0, %c0_i32 : i32, i32
  }
}

module attributes {stable_mosaic.version = 11 : i64} {
  func.func @_spade_fused_kernel(%arg0: i32, %arg1: i32, %arg2: memref<1x256x4xf32, #tpu.memory_space<vmem>>, %arg3: memref<1x1x288x384xbf16, #tpu.memory_space<vmem>>, %arg4: memref<3x384x8xbf16, #tpu.memory_space<vmem>>, %arg5: memref<1x8xf32, #tpu.memory_space<vmem>>, %arg6: memref<1x4xf32, #tpu.memory_space<vmem>>, %arg7: memref<1x4xf32, #tpu.memory_space<vmem>>, %arg8: memref<1x256x4xf32, #tpu.memory_space<vmem>>) attributes {dimension_semantics = [#tpu.dimension_semantics<parallel>, #tpu.dimension_semantics<parallel>], iteration_bounds = array<i64: 2, 1>, scalar_prefetch = 0 : i64, scratch_operands = 0 : i64, tpu.core_type = #tpu.core_type<tc>, window_params = [{transform_indices = @transform_0, window_bounds = array<i64: 1, 256, 4>}, {transform_indices = @transform_1, window_bounds = array<i64: 1, 1, 288, 384>}, {pipeline_mode = #tpu.pipeline_mode<synchronous>, transform_indices = @transform_2, window_bounds = array<i64: 3, 384, 8>}, {pipeline_mode = #tpu.pipeline_mode<synchronous>, transform_indices = @transform_3, window_bounds = array<i64: 1, 8>}, {pipeline_mode = #tpu.pipeline_mode<synchronous>, transform_indices = @transform_4, window_bounds = array<i64: 1, 4>}, {pipeline_mode = #tpu.pipeline_mode<synchronous>, transform_indices = @transform_5, window_bounds = array<i64: 1, 4>}, {transform_indices = @transform_6, window_bounds = array<i64: 1, 256, 4>}]} {
    %cst = arith.constant 0.000000e+00 : f32
    %0 = vector.broadcast %cst : f32 to vector<256x8xf32>
    %c0 = arith.constant 0 : index
    %c0_0 = arith.constant 0 : index
    %1 = vector.load %arg5[%c0, %c0_0] : memref<1x8xf32, #tpu.memory_space<vmem>>, vector<1x8xf32>
    %2 = vector.broadcast %1 : vector<1x8xf32> to vector<256x8xf32>
    %3 = arith.addf %0, %2 : vector<256x8xf32>
    %c0_1 = arith.constant 0 : index
    %c0_2 = arith.constant 0 : index
    %c0_3 = arith.constant 0 : index
    %c0_4 = arith.constant 0 : index
    %4 = vector.load %arg3[%c0_1, %c0_2, %c0_3, %c0_4] : memref<1x1x288x384xbf16, #tpu.memory_space<vmem>>, vector<1x1x256x384xbf16>
    %5 = vector.shape_cast %4 : vector<1x1x256x384xbf16> to vector<256x384xbf16>
    %c0_5 = arith.constant 0 : index
    %c0_6 = arith.constant 0 : index
    %c0_7 = arith.constant 0 : index
    %6 = vector.load %arg4[%c0_5, %c0_6, %c0_7] : memref<3x384x8xbf16, #tpu.memory_space<vmem>>, vector<1x384x8xbf16>
    %7 = vector.shape_cast %6 : vector<1x384x8xbf16> to vector<384x8xbf16>
    %cst_8 = arith.constant dense<0.000000e+00> : vector<256x8xf32>
    %8 = tpu.matmul %5, %7, %cst_8 {dimension_numbers = #tpu.dot_dimension_numbers<[1], [0], [0], [1], [0, 0, 1, 1], [], []>} : vector<256x384xbf16>, vector<384x8xbf16>, vector<256x8xf32> -> vector<256x8xf32>
    %9 = arith.addf %3, %8 : vector<256x8xf32>
    %c0_9 = arith.constant 0 : index
    %c0_10 = arith.constant 0 : index
    %c16 = arith.constant 16 : index
    %c0_11 = arith.constant 0 : index
    %10 = vector.load %arg3[%c0_9, %c0_10, %c16, %c0_11] : memref<1x1x288x384xbf16, #tpu.memory_space<vmem>>, vector<1x1x256x384xbf16>
    %11 = vector.shape_cast %10 : vector<1x1x256x384xbf16> to vector<256x384xbf16>
    %c1 = arith.constant 1 : index
    %c0_12 = arith.constant 0 : index
    %c0_13 = arith.constant 0 : index
    %12 = vector.load %arg4[%c1, %c0_12, %c0_13] : memref<3x384x8xbf16, #tpu.memory_space<vmem>>, vector<1x384x8xbf16>
    %13 = vector.shape_cast %12 : vector<1x384x8xbf16> to vector<384x8xbf16>
    %cst_14 = arith.constant dense<0.000000e+00> : vector<256x8xf32>
    %14 = tpu.matmul %11, %13, %cst_14 {dimension_numbers = #tpu.dot_dimension_numbers<[1], [0], [0], [1], [0, 0, 1, 1], [], []>} : vector<256x384xbf16>, vector<384x8xbf16>, vector<256x8xf32> -> vector<256x8xf32>
    %15 = arith.addf %9, %14 : vector<256x8xf32>
    %c0_15 = arith.constant 0 : index
    %c0_16 = arith.constant 0 : index
    %c32 = arith.constant 32 : index
    %c0_17 = arith.constant 0 : index
    %16 = vector.load %arg3[%c0_15, %c0_16, %c32, %c0_17] : memref<1x1x288x384xbf16, #tpu.memory_space<vmem>>, vector<1x1x256x384xbf16>
    %17 = vector.shape_cast %16 : vector<1x1x256x384xbf16> to vector<256x384xbf16>
    %c2 = arith.constant 2 : index
    %c0_18 = arith.constant 0 : index
    %c0_19 = arith.constant 0 : index
    %18 = vector.load %arg4[%c2, %c0_18, %c0_19] : memref<3x384x8xbf16, #tpu.memory_space<vmem>>, vector<1x384x8xbf16>
    %19 = vector.shape_cast %18 : vector<1x384x8xbf16> to vector<384x8xbf16>
    %cst_20 = arith.constant dense<0.000000e+00> : vector<256x8xf32>
    %20 = tpu.matmul %17, %19, %cst_20 {dimension_numbers = #tpu.dot_dimension_numbers<[1], [0], [0], [1], [0, 0, 1, 1], [], []>} : vector<256x384xbf16>, vector<384x8xbf16>, vector<256x8xf32> -> vector<256x8xf32>
    %21 = arith.addf %15, %20 : vector<256x8xf32>
    %22 = vector.extract_strided_slice %21 {offsets = [0, 0], sizes = [256, 4], strides = [1, 1]} : vector<256x8xf32> to vector<256x4xf32>
    %23 = vector.extract_strided_slice %21 {offsets = [0, 4], sizes = [256, 4], strides = [1, 1]} : vector<256x8xf32> to vector<256x4xf32>
    %c0_21 = arith.constant 0 : index
    %c0_22 = arith.constant 0 : index
    %c0_23 = arith.constant 0 : index
    %24 = vector.load %arg2[%c0_21, %c0_22, %c0_23] : memref<1x256x4xf32, #tpu.memory_space<vmem>>, vector<1x256x4xf32>
    %25 = vector.shape_cast %24 : vector<1x256x4xf32> to vector<256x4xf32>
    %c0_24 = arith.constant 0 : index
    %c0_25 = arith.constant 0 : index
    %26 = vector.load %arg6[%c0_24, %c0_25] : memref<1x4xf32, #tpu.memory_space<vmem>>, vector<1x4xf32>
    %27 = vector.broadcast %26 : vector<1x4xf32> to vector<256x4xf32>
    %28 = arith.subf %25, %27 : vector<256x4xf32>
    %c0_26 = arith.constant 0 : index
    %c0_27 = arith.constant 0 : index
    %29 = vector.load %arg7[%c0_26, %c0_27] : memref<1x4xf32, #tpu.memory_space<vmem>>, vector<1x4xf32>
    %30 = vector.broadcast %29 : vector<1x4xf32> to vector<256x4xf32>
    %31 = arith.mulf %28, %30 : vector<256x4xf32>
    %cst_28 = arith.constant 1.000000e+00 : f32
    %32 = vector.broadcast %cst_28 : f32 to vector<256x4xf32>
    %33 = arith.addf %32, %22 : vector<256x4xf32>
    %34 = arith.mulf %31, %33 : vector<256x4xf32>
    %35 = arith.addf %34, %23 : vector<256x4xf32>
    %c0_29 = arith.constant 0 : index
    %c0_30 = arith.constant 0 : index
    %c0_31 = arith.constant 0 : index
    %36 = vector.load %arg8[%c0_29, %c0_30, %c0_31] : memref<1x256x4xf32, #tpu.memory_space<vmem>>, vector<1x256x4xf32>
    %37 = vector.shape_cast %36 : vector<1x256x4xf32> to vector<256x4xf32>
    %38 = vector.shape_cast %35 : vector<256x4xf32> to vector<1x256x4xf32>
    tpu.vector_store %arg8[%c0_29, %c0_30, %c0_31], %38 {strides = array<i32>} : memref<1x256x4xf32, #tpu.memory_space<vmem>>, vector<1x256x4xf32>,
    return
  }
  func.func @transform_0(%arg0: i32, %arg1: i32) -> (i32, i32, i32) {
    %c0_i32 = arith.constant 0 : i32
    %c0_i32_0 = arith.constant 0 : i32
    return %arg0, %arg1, %c0_i32 : i32, i32, i32
  }
  func.func @transform_1(%arg0: i32, %arg1: i32) -> (i32, i32, i32, i32) {
    %c0_i32 = arith.constant 0 : i32
    %c0_i32_0 = arith.constant 0 : i32
    %c0_i32_1 = arith.constant 0 : i32
    return %arg0, %arg1, %c0_i32, %c0_i32_0 : i32, i32, i32, i32
  }
  func.func @transform_2(%arg0: i32, %arg1: i32) -> (i32, i32, i32) {
    %c0_i32 = arith.constant 0 : i32
    %c0_i32_0 = arith.constant 0 : i32
    %c0_i32_1 = arith.constant 0 : i32
    %c0_i32_2 = arith.constant 0 : i32
    return %c0_i32, %c0_i32_0, %c0_i32_1 : i32, i32, i32
  }
  func.func @transform_3(%arg0: i32, %arg1: i32) -> (i32, i32) {
    %c0_i32 = arith.constant 0 : i32
    %c0_i32_0 = arith.constant 0 : i32
    %c0_i32_1 = arith.constant 0 : i32
    return %c0_i32, %c0_i32_0 : i32, i32
  }
  func.func @transform_4(%arg0: i32, %arg1: i32) -> (i32, i32) {
    %c0_i32 = arith.constant 0 : i32
    %c0_i32_0 = arith.constant 0 : i32
    %c0_i32_1 = arith.constant 0 : i32
    return %c0_i32, %c0_i32_0 : i32, i32
  }
  func.func @transform_5(%arg0: i32, %arg1: i32) -> (i32, i32) {
    %c0_i32 = arith.constant 0 : i32
    %c0_i32_0 = arith.constant 0 : i32
    %c0_i32_1 = arith.constant 0 : i32
    return %c0_i32, %c0_i32_0 : i32, i32
  }
  func.func @transform_6(%arg0: i32, %arg1: i32) -> (i32, i32, i32) {
    %c0_i32 = arith.constant 0 : i32
    %c0_i32_0 = arith.constant 0 : i32
    return %arg0, %arg1, %c0_i32 : i32, i32, i32
  }
}

</mosaic_0001>

<bundles_post_ra>
// kernel: spade_forward.2
= control target key start
LH: loop header
LB: loop body
LE: loop exit
PB: predicated region body
PF: predicated region fallthrough
CT: control target
= control target key end

     0   :  { %s1102_s12 = smov 0   ;;  %s1224_s0 = inlined_call_operand.vmem [shape: bf16[512,36], index: 0, kind: input, shape index: {}]   ;;  %s1225_s1 = inlined_call_operand.vmem [shape: bf16[36,128], index: 1, kind: input, shape index: {}]   ;;  %s1226_s2 = inlined_call_operand.vmem [shape: f32[1,128], index: 2, kind: input, shape index: {}]   ;;  %s1227_s3 = inlined_call_operand.vmem [shape: bf16[512,128], index: 3, kind: output, shape index: {}]  }
   0x1 LB: > { %s776_s13 = sadd.s32 4294967295, %s1080_s12   ;;  %p780_p0 = scmp.ge.s32.totalorder %s1080_s12, 1  ;;  %s1080_s12 = sphi %s1102_s12, %s13_s12  }
   0x2   : > { %p138_p1 = scmp.lt.s32.totalorder %s1080_s12, 3 }
   0x4   : > { %p139_p2 = pnand %p780_p0, %p138_p1 }
   0x5   : > { %s781_s18 = sshll.u32 (!%p139_p2), %s776_s13, 5 }
   0x6   : > { %142 = sbr.rel (%p139_p2) target bundleno = 254 (0xfe), region = 32  ;;  %p163_p3 = scmp.lt.s32.totalorder (!%p139_p2), %s781_s18, 63 }
   0xb   : > { %v1055_v0 = vld [vmem:[%s1225_s1 + $0x10] ss:$0 sps:$4 sm:$0x33]   ;;  %vm363_vm0 = vcmask 1041408   ;;  %v1056_v1 = vld [vmem:[%s1225_s1 + $0x8] sm:$0xff]   ;;  %v1057_v3 = vld [vmem:[%s1225_s1] sm:$0xff]  }
   0xc   : > { %1045 = vmatprep.subr.msk.bf16.mxu0 %vm363_vm0, %v1055_v0  ;;  %1046 = vmatprep.subr.msk.bf16.mxu1 %vm363_vm0, %v1055_v0  ;;  %v365_v2 = vsel %vm363_vm0, %v1055_v0, 0  ;;  %s1229_s18 = smov (!%p163_p3, %s781_s18), 63  ;;  %vm314_vm1 = vcmask 293888   ;;  %v1164_v20 = vld [vmem:[%s1226_s2] ss:$0 sm:$0xff] }
   0xd   : > { %1002 = vmatpush3.bf16.msra.mxu0 %v365_v2  ;;  %1042 = vmatpush3.bf16.msra.mxu1 %v365_v2  ;;  %s782_s21 = sshll.u32 %s1229_s18, 2 }
   0xe   : > { %1003 = vmatprep.subr.bf16.mxu0 %v1056_v1  ;;  %1040 = vmatprep.subr.bf16.mxu1 %v1056_v1  ;;  %s1127_s24 = scalar_lea.vmem %s1224_s0, %s782_s21  ;;  %s1179_s29 = scalar_lea.vmem %s1227_s3, %s782_s21 }
   0xf   : > { %v1058_v4 = vld [vmem:[%s1127_s24] sm:$0xff]   ;;  %v1060_v6 = vld [vmem:[%s1127_s24 + $0x8] sm:$0xff]   ;;  %v1062_v8 = vld [vmem:[%s1127_s24 + $0x10] sm:$0xff]  }
  0x10   : > { %v1059_v5 = vld [vmem:[%s1127_s24 + $0x40] sm:$0xff]   ;;  %1007 = vmatprep.mubr.msk.bf16.mxu0 %vm314_vm1, %v1058_v4  ;;  %v1061_v7 = vld [vmem:[%s1127_s24 + $0x48] sm:$0xff]   ;;  %v1063_v9 = vld [vmem:[%s1127_s24 + $0x50] sm:$0xff]  }
  0x11   : > { %1004 = vmatpush3.bf16.msra.mxu0 %v1056_v1  ;;  %1043 = vmatpush3.bf16.msra.mxu1 %v1056_v1  ;;  %v1064_v10 = vld [vmem:[%s1127_s24 + $0x18] sm:$0xff]   ;;  %v1066_v12 = vld [vmem:[%s1127_s24 + $0x20] sm:$0xff]   ;;  %v1068_v14 = vld [vmem:[%s1127_s24 + $0x28] sm:$0xff]  }
  0x12   : > { %1005 = vmatprep.subr.bf16.mxu0 %v1057_v3  ;;  %1041 = vmatprep.subr.bf16.mxu1 %v1057_v3  ;;  %v1065_v11 = vld [vmem:[%s1127_s24 + $0x58] sm:$0xff]   ;;  %v1067_v13 = vld [vmem:[%s1127_s24 + $0x60] sm:$0xff]   ;;  %v1069_v15 = vld [vmem:[%s1127_s24 + $0x68] sm:$0xff]  }
  0x13   : > { %1023 = vmatprep.mubr.msk.bf16.mxu1 %vm314_vm1, %v1059_v5  ;;  %v1070_v16 = vld [vmem:[%s1127_s24 + $0x30] sm:$0xff]   ;;  %v1072_v18 = vld [vmem:[%s1127_s24 + $0x38] sm:$0xff]  }
  0x14   : > { %v1071_v17 = vld [vmem:[%s1127_s24 + $0x70] sm:$0xff]   ;;  %v1073_v19 = vld [vmem:[%s1127_s24 + $0x78] sm:$0xff]  }
  0x15   : > { %1006 = vmatpush3.bf16.msra.mxu0 %v1057_v3  ;;  %1044 = vmatpush3.bf16.msra.mxu1 %v1057_v3 }
  0x18   : > { %1008 = vmatmul.mubr.msk.bf16.vlgmr.msra.gmra.mxu0 %vm314_vm1, %v1060_v6  ;;  %1024 = vmatmul.mubr.msk.bf16.vlgmr.msra.gmra.mxu1 %vm314_vm1, %v1061_v7 }
  0x19   : > { %1011 = vmatprep.mubr.msk.bf16.mxu0 %vm314_vm1, %v1062_v8  ;;  %1027 = vmatprep.mubr.msk.bf16.mxu1 %vm314_vm1, %v1063_v9 }
  0x20   : > { %1012 = vmatmul.mubr.msk.bf16.gmra.mxu0 %vm314_vm1, %v1064_v10  ;;  %1028 = vmatmul.mubr.msk.bf16.gmra.mxu1 %vm314_vm1, %v1065_v11 }
  0x21   : > { %1015 = vmatprep.mubr.msk.bf16.mxu0 %vm314_vm1, %v1066_v12  ;;  %1031 = vmatprep.mubr.msk.bf16.mxu1 %vm314_vm1, %v1067_v13 }
  0x28   : > { %1016 = vmatmul.mubr.msk.bf16.gmra.mxu0 %vm314_vm1, %v1068_v14  ;;  %1032 = vmatmul.mubr.msk.bf16.gmra.mxu1 %vm314_vm1, %v1069_v15 }
  0x29   : > { %1019 = vmatprep.mubr.msk.bf16.mxu0 %vm314_vm1, %v1070_v16  ;;  %1035 = vmatprep.mubr.msk.bf16.mxu1 %vm314_vm1, %v1071_v17 }
  0x30   : > { %1020 = vmatmul.mubr.msk.bf16.gmra.mxu0 %vm314_vm1, %v1072_v18  ;;  %1036 = vmatmul.mubr.msk.bf16.gmra.mxu1 %vm314_vm1, %v1073_v19 }
  0xd8   : > { %v1009_v21 = vpop.f32.mrf.mxu0  ;;  %v1025_v22 = vpop.f32.mrf.mxu1 }
  0xd9   : > { %v410_v23 = vadd.f32 %v1009_v21, %v1164_v20  ;;  %v474_v24 = vadd.f32 %v1025_v22, %v1164_v20 }
  0xda   : > { %v401_v25 = vpop.f32.mrf.mxu0  ;;  %v465_v26 = vpop.f32.mrf.mxu1 }
  0xdb   : > { %v402_v27 = vadd.f32 %v1164_v20, %v401_v25  ;;  %v466_v28 = vadd.f32 %v1164_v20, %v465_v26  ;;  %v530_v33 = vmax.f32 %v410_v23, 0.0  ;;  %v546_v34 = vmax.f32 %v474_v24, 0.0 }
  0xdc   : > { %v1010_v29 = vpop.f32.mrf.mxu0  ;;  %v1026_v30 = vpop.f32.mrf.mxu1 }
  0xdd   : > { %v413_v31 = vadd.f32 %v1010_v29, %v1164_v20  ;;  %v477_v32 = vadd.f32 %v1026_v30, %v1164_v20  ;;  %v528_v41 = vmax.f32 %v402_v27, 0.0  ;;  %v544_v42 = vmax.f32 %v466_v28, 0.0 }
  0xde   : > { %v404_v35 = vpop.f32.mrf.mxu0  ;;  %v468_v36 = vpop.f32.mrf.mxu1 }
  0xdf   : > { %v531_v37 = vmax.f32 %v413_v31, 0.0  ;;  %v547_v38 = vmax.f32 %v477_v32, 0.0  ;;  %v405_v39 = vadd.f32 %v1164_v20, %v404_v35  ;;  %v469_v40 = vadd.f32 %v1164_v20, %v468_v36 }
  0xe0   : > { %v1013_v43 = vpop.f32.mrf.mxu0  ;;  %v1029_v44 = vpop.f32.mrf.mxu1 }
  0xe1   : > { %v895_v45 = vpack.c.bf16 %v531_v37, %v530_v33  ;;  %v935_v46 = vpack.c.bf16 %v547_v38, %v546_v34  ;;  %v529_v47 = vmax.f32 %v405_v39, 0.0  ;;  %v545_v48 = vmax.f32 %v469_v40, 0.0 }
  0xe2   : > { %v426_v49 = vadd.f32 %v1013_v43, %v1164_v20  ;;  %v490_v50 = vadd.f32 %v1029_v44, %v1164_v20  ;;  %v417_v51 = vpop.f32.mrf.mxu0  ;;  %v481_v52 = vpop.f32.mrf.mxu1 }
  0xe3   : > { %967 = vst [vmem:[%s1179_s29 + $0x8] sm:$0xff] %v895_v45   ;;  %975 = vst [vmem:[%s1179_s29 + $0x48] sm:$0xff] %v935_v46   ;;  %v890_v53 = vpack.c.bf16 %v529_v47, %v528_v41  ;;  %v930_v54 = vpack.c.bf16 %v545_v48, %v544_v42  ;;  %v418_v55 = vadd.f32 %v1164_v20, %v417_v51 }
  0xe4   : > { %v482_v56 = vadd.f32 %v1164_v20, %v481_v52  ;;  %v1014_v57 = vpop.f32.mrf.mxu0  ;;  %v1030_v58 = vpop.f32.mrf.mxu1  ;;  %v534_v61 = vmax.f32 %v426_v49, 0.0  ;;  %v550_v62 = vmax.f32 %v490_v50, 0.0 }
  0xe5   : > { %891 = vst [vmem:[%s1179_s29] sm:$0xff] %v890_v53   ;;  %974 = vst [vmem:[%s1179_s29 + $0x40] sm:$0xff] %v930_v54   ;;  %v429_v59 = vadd.f32 %v1014_v57, %v1164_v20  ;;  %v493_v60 = vadd.f32 %v1030_v58, %v1164_v20  ;;  %v532_v5 = vmax.f32 %v418_v55, 0.0 }
  0xe6   : > { %v420_v63 = vpop.f32.mrf.mxu0  ;;  %v484_v0 = vpop.f32.mrf.mxu1  ;;  %v548_v6 = vmax.f32 %v482_v56, 0.0 }
  0xe7   : > { %v535_v1 = vmax.f32 %v429_v59, 0.0  ;;  %v551_v2 = vmax.f32 %v493_v60, 0.0  ;;  %v421_v3 = vadd.f32 %v1164_v20, %v420_v63  ;;  %v485_v4 = vadd.f32 %v1164_v20, %v484_v0 }
  0xe8   : > { %v1017_v7 = vpop.f32.mrf.mxu0  ;;  %v1033_v8 = vpop.f32.mrf.mxu1 }
  0xe9   : > { %v905_v9 = vpack.c.bf16 %v535_v1, %v534_v61  ;;  %v945_v10 = vpack.c.bf16 %v551_v2, %v550_v62  ;;  %v533_v11 = vmax.f32 %v421_v3, 0.0  ;;  %v549_v12 = vmax.f32 %v485_v4, 0.0 }
  0xea   : > { %v442_v13 = vadd.f32 %v1017_v7, %v1164_v20  ;;  %v506_v14 = vadd.f32 %v1033_v8, %v1164_v20  ;;  %v433_v15 = vpop.f32.mrf.mxu0  ;;  %v497_v16 = vpop.f32.mrf.mxu1 }
  0xeb   : > { %969 = vst [vmem:[%s1179_s29 + $0x18] sm:$0xff] %v905_v9   ;;  %977 = vst [vmem:[%s1179_s29 + $0x58] sm:$0xff] %v945_v10   ;;  %v900_v17 = vpack.c.bf16 %v533_v11, %v532_v5  ;;  %v940_v18 = vpack.c.bf16 %v549_v12, %v548_v6  ;;  %v434_v19 = vadd.f32 %v1164_v20, %v433_v15 }
  0xec   : > { %v498_v21 = vadd.f32 %v1164_v20, %v497_v16  ;;  %v1018_v22 = vpop.f32.mrf.mxu0  ;;  %v1034_v23 = vpop.f32.mrf.mxu1  ;;  %v538_v26 = vmax.f32 %v442_v13, 0.0  ;;  %v554_v27 = vmax.f32 %v506_v14, 0.0 }
  0xed   : > { %968 = vst [vmem:[%s1179_s29 + $0x10] sm:$0xff] %v900_v17   ;;  %976 = vst [vmem:[%s1179_s29 + $0x50] sm:$0xff] %v940_v18   ;;  %v445_v24 = vadd.f32 %v1018_v22, %v1164_v20  ;;  %v509_v25 = vadd.f32 %v1034_v23, %v1164_v20  ;;  %v536_v34 = vmax.f32 %v434_v19, 0.0 }
  0xee   : > { %v436_v28 = vpop.f32.mrf.mxu0  ;;  %v500_v29 = vpop.f32.mrf.mxu1  ;;  %v552_v35 = vmax.f32 %v498_v21, 0.0 }
  0xef   : > { %v539_v30 = vmax.f32 %v445_v24, 0.0  ;;  %v555_v31 = vmax.f32 %v509_v25, 0.0  ;;  %v437_v32 = vadd.f32 %v1164_v20, %v436_v28  ;;  %v501_v33 = vadd.f32 %v1164_v20, %v500_v29 }
  0xf0   : > { %v1021_v36 = vpop.f32.mrf.mxu0  ;;  %v1037_v37 = vpop.f32.mrf.mxu1 }
  0xf1   : > { %v915_v38 = vpack.c.bf16 %v539_v30, %v538_v26  ;;  %v955_v39 = vpack.c.bf16 %v555_v31, %v554_v27  ;;  %v537_v40 = vmax.f32 %v437_v32, 0.0  ;;  %v553_v41 = vmax.f32 %v501_v33, 0.0 }
  0xf2   : > { %v458_v42 = vadd.f32 %v1021_v36, %v1164_v20  ;;  %v522_v43 = vadd.f32 %v1037_v37, %v1164_v20  ;;  %v449_v44 = vpop.f32.mrf.mxu0  ;;  %v513_v45 = vpop.f32.mrf.mxu1 }
  0xf3   : > { %971 = vst [vmem:[%s1179_s29 + $0x28] sm:$0xff] %v915_v38   ;;  %979 = vst [vmem:[%s1179_s29 + $0x68] sm:$0xff] %v955_v39   ;;  %v910_v46 = vpack.c.bf16 %v537_v40, %v536_v34  ;;  %v950_v47 = vpack.c.bf16 %v553_v41, %v552_v35  ;;  %v450_v48 = vadd.f32 %v1164_v20, %v449_v44 }
  0xf4   : > { %v514_v49 = vadd.f32 %v1164_v20, %v513_v45  ;;  %v1022_v50 = vpop.f32.mrf.mxu0  ;;  %v1038_v51 = vpop.f32.mrf.mxu1  ;;  %v542_v54 = vmax.f32 %v458_v42, 0.0  ;;  %v558_v55 = vmax.f32 %v522_v43, 0.0 }
  0xf5   : > { %970 = vst [vmem:[%s1179_s29 + $0x20] sm:$0xff] %v910_v46   ;;  %978 = vst [vmem:[%s1179_s29 + $0x60] sm:$0xff] %v950_v47   ;;  %v461_v52 = vadd.f32 %v1022_v50, %v1164_v20  ;;  %v525_v53 = vadd.f32 %v1038_v51, %v1164_v20  ;;  %v540_v62 = vmax.f32 %v450_v48, 0.0 }
  0xf6   : > { %v452_v56 = vpop.f32.mrf.mxu0  ;;  %v516_v57 = vpop.f32.mrf.mxu1  ;;  %v556_v63 = vmax.f32 %v514_v49, 0.0 }
  0xf7   : > { %v543_v58 = vmax.f32 %v461_v52, 0.0  ;;  %v559_v59 = vmax.f32 %v525_v53, 0.0  ;;  %v453_v60 = vadd.f32 %v1164_v20, %v452_v56  ;;  %v517_v61 = vadd.f32 %v1164_v20, %v516_v57 }
  0xf9   : > { %v925_v0 = vpack.c.bf16 %v543_v58, %v542_v54  ;;  %v965_v1 = vpack.c.bf16 %v559_v59, %v558_v55  ;;  %v541_v2 = vmax.f32 %v453_v60, 0.0  ;;  %v557_v3 = vmax.f32 %v517_v61, 0.0 }
  0xfb   : > { %973 = vst [vmem:[%s1179_s29 + $0x38] sm:$0xff] %v925_v0   ;;  %981 = vst [vmem:[%s1179_s29 + $0x78] sm:$0xff] %v965_v1   ;;  %v920_v4 = vpack.c.bf16 %v541_v2, %v540_v62  ;;  %v960_v5 = vpack.c.bf16 %v557_v3, %v556_v63 }
  0xfd   : > { %972 = vst [vmem:[%s1179_s29 + $0x30] sm:$0xff] %v920_v4   ;;  %980 = vst [vmem:[%s1179_s29 + $0x70] sm:$0xff] %v960_v5  }
  0xfe PF: > { %s13_s12 = sadd.s32 1, %s1080_s12  }
  0xff   : > { %p10_p4 = scmp.ge.s32.totalorder %s13_s12, 4  }
 0x101   :  { %12 = sbr.rel (!%p10_p4) target bundleno = 1 (0x1), region = 62 }

// kernel: spade_forward.3
= control target key start
LH: loop header
LB: loop body
LE: loop exit
PB: predicated region body
PF: predicated region fallthrough
CT: control target
= control target key end

     0   :  { %s4578_s21 = smov 0   ;;  %s4580_s22 = smov 0   ;;  %s5849_s0 = inlined_call_operand.vmem [shape: f32[2,256,4], index: 0, kind: input, shape index: {}]   ;;  %s5850_s1 = inlined_call_operand.vmem [shape: bf16[2,1,288,384], index: 1, kind: input, shape index: {}]   ;;  %s5851_s2 = inlined_call_operand.vmem [shape: bf16[3,384,8], index: 2, kind: input, shape index: {}]   ;;  %s5852_s3 = inlined_call_operand.vmem [shape: f32[1,8], index: 3, kind: input, shape index: {}]   ;;  %s5853_s4 = inlined_call_operand.vmem [shape: f32[1,4], index: 4, kind: input, shape index: {}]   ;;  %s5854_s5 = inlined_call_operand.vmem [shape: f32[1,4], index: 5, kind: input, shape index: {}]   ;;  %s5855_s6 = inlined_call_operand.vmem [shape: f32[2,256,4], index: 6, kind: output, shape index: {}]  }
   0x1   :  { %s4582_s23 = smov 0  }
   0x2 LB: > { %s28_s24 = sadd.s32 1, %s4536_s22  ;;  %p3413_p0 = scmp.ge.s32.totalorder %s4540_s23, 1  ;;  %s4540_s23 = sphi %s4582_s23, %s16_s23   ;;  %s4536_s22 = sphi %s4580_s22, %s5887_s22   ;;  %s4532_s21 = sphi %s4578_s21, %s5886_s21  }
   0x3   : > { %p30_p1 = scmp.ge.s32.totalorder %s28_s24, 2  ;;  %p249_p2 = scmp.lt.s32.totalorder %s4540_s23, 3 }
   0x5   : > { %s5889_s24 = smov (%p30_p1, %s28_s24), 0  ;;  %p250_p3 = pnand %p3413_p0, %p249_p2 }
   0x7   : > { %253 = sbr.rel (%p250_p3) target bundleno = 650 (0x28a), region = 44 }
   0xc   : > { %v4332_v0 = vld [vmem:[%s5851_s2 + $0x78] sm:$0xff]   ;;  %v4334_v2 = vld [vmem:[%s5851_s2 + $0x70] sm:$0xff]   ;;  %p297_p4 = scmp.lt.s32.totalorder %s4532_s21, 1  ;;  %v4336_v4 = vld [vmem:[%s5851_s2 + $0x68] sm:$0xff]   ;;  %s4542_s16 = smov 124   ;;  %vm3268_vm0 = vcmask 31744  }
   0xd   : > { %v4333_v1 = vld [vmem:[%s5851_s2 + $0x38] sm:$0xff]   ;;  %3738 = vmatprep.subr.bf16.mxu0 %v4332_v0  ;;  %4290 = vmatprep.subr.bf16.mxu1 %v4332_v0  ;;  %v4335_v3 = vld [vmem:[%s5851_s2 + $0x30] sm:$0xff]   ;;  %v4337_v5 = vld [vmem:[%s5851_s2 + $0x28] sm:$0xff]  }
   0xe   : > { %3739 = vmatpush3.bf16.msra.mxu0 %v4333_v1  ;;  %4298 = vmatpush3.bf16.msra.mxu1 %v4333_v1  ;;  %s5891_s21 = smov (!%p297_p4, %s4532_s21), 1  ;;  %v4338_v6 = vld [vmem:[%s5851_s2 + $0x60] sm:$0xff]   ;;  %v4340_v8 = vld [vmem:[%s5851_s2 + $0x58] sm:$0xff]   ;;  %v4342_v10 = vld [vmem:[%s5851_s2 + $0x50] sm:$0xff]  }
   0xf   : > { %3740 = vmatprep.subr.bf16.mxu0 %v4334_v2  ;;  %4291 = vmatprep.subr.bf16.mxu1 %v4334_v2  ;;  %s4306_s15 = smul.u32 432, %s5891_s21  ;;  %v4339_v7 = vld [vmem:[%s5851_s2 + $0x20] sm:$0xff]   ;;  %v4341_v9 = vld [vmem:[%s5851_s2 + $0x18] sm:$0xff]   ;;  %v4343_v13 = vld [vmem:[%s5851_s2 + $0x10] sm:$0xff]   ;;  %s3736_s17 = sshll.u32 %s5891_s21, 8 }
  0x10   : > { %v4344_v14 = vld [vmem:[%s5851_s2 + $0x48] sm:$0xff]   ;;  %v4346_v16 = vld [vmem:[%s5851_s2 + $0x40] sm:$0xff]   ;;  %v4354_v18 = vld [vmem:[%s5851_s2 + $0xb8] sm:$0xff]   ;;  %s5631_s20 = scalar_lea.vmem %s5849_s0, %s3736_s17  ;;  %s5661_s7 = scalar_lea.vmem %s5855_s6, %s3736_s17 }
  0x11   : > { %s4629_s26 = scalar_lea.vmem %s5850_s1, %s4306_s15  ;;  %v4345_v15 = vld [vmem:[%s5851_s2 + $0x8] sm:$0xff]   ;;  %v4347_v17 = vld [vmem:[%s5851_s2] sm:$0xff]   ;;  %v4355_v19 = vld [vmem:[%s5851_s2 + $0x178] sm:$0xff]  }
  0x12   : > { %3741 = vmatpush3.bf16.msra.mxu0 %v4335_v3  ;;  %4299 = vmatpush3.bf16.msra.mxu1 %v4335_v3  ;;  %v4350_v11 = vld [vmem:[%s4629_s26 + $0x4] ss:$12 sps:$4 sm:$0xff]   ;;  %v4348_v20 = vld [vmem:[%s4629_s26] ss:$12 sps:$4 sm:$0xff]   ;;  %v4666_v23 = vld [vmem:[%s4629_s26 + $0x1c] ss:$12 sps:$4 sm:$0xff]  }
  0x13   : > { %3742 = vmatprep.subr.bf16.mxu0 %v4336_v4  ;;  %4292 = vmatprep.subr.bf16.mxu1 %v4336_v4  ;;  %v4353_v12 = vld [vmem:[%s4629_s26 + $0x124] ss:$12 sps:$4 sm:$0xff]   ;;  %v4351_v21 = vld [vmem:[%s4629_s26 + $0x120] ss:$12 sps:$4 sm:$0xff]   ;;  %v4359_v24 = vld [vmem:[%s4629_s26 + $0x13c] ss:$12 sps:$4 sm:$0xff]  }
  0x14   : > { %878 = vmatprep.mubr.bf16.mxu0 %v4350_v11  ;;  %974 = vmatprep.mubr.bf16.mxu1 %v4353_v12  ;;  %v4356_v22 = vld [vmem:[%s5851_s2 + $0xb0] sm:$0xff]   ;;  %v4363_v26 = vld [vmem:[%s5851_s2 + $0xa8] sm:$0xff]   ;;  %v4680_v28 = vld [vmem:[%s4629_s26 + $0x18] ss:$12 sps:$4 sm:$0xff]  }
  0x15   : > { %v4365_v25 = vld [vmem:[%s5851_s2 + $0x170] sm:$0xff]   ;;  %v4381_v27 = vld [vmem:[%s5851_s2 + $0x168] sm:$0xff]   ;;  %v4362_v29 = vld [vmem:[%s4629_s26 + $0x138] ss:$12 sps:$4 sm:$0xff]  }
  0x16   : > { %3743 = vmatpush3.bf16.msra.mxu0 %v4337_v5  ;;  %4300 = vmatpush3.bf16.msra.mxu1 %v4337_v5  ;;  %v4364_v30 = vld [vmem:[%s5851_s2 + $0xa0] sm:$0xff]   ;;  %v4696_v34 = vld [vmem:[%s4629_s26 + $0x30] ss:$12 sps:$4 sm:$0xff]   ;;  %v4706_v38 = vld [vmem:[%s4629_s26 + $0x4c] ss:$12 sps:$4 sm:$0xff]  }
  0x17   : > { %3744 = vmatprep.subr.bf16.mxu0 %v4338_v6  ;;  %4293 = vmatprep.subr.bf16.mxu1 %v4338_v6  ;;  %v4687_v31 = vld [vmem:[%s4629_s26 + $0x34] ss:$12 sps:$4 sm:$0xff]   ;;  %v4372_v35 = vld [vmem:[%s5851_s2 + $0x98] sm:$0xff]   ;;  %v4380_v41 = vld [vmem:[%s5851_s2 + $0x88] sm:$0xff]  }
  0x18   : > { %v4368_v32 = vld [vmem:[%s4629_s26 + $0x154] ss:$12 sps:$4 sm:$0xff]   ;;  %v4371_v36 = vld [vmem:[%s4629_s26 + $0x150] ss:$12 sps:$4 sm:$0xff]   ;;  %v4376_v39 = vld [vmem:[%s4629_s26 + $0x16c] ss:$12 sps:$4 sm:$0xff]  }
  0x19   : > { %v4390_v33 = vld [vmem:[%s5851_s2 + $0x160] sm:$0xff]   ;;  %v4373_v37 = vld [vmem:[%s5851_s2 + $0x90] sm:$0xff]   ;;  %v4405_v45 = vld [vmem:[%s5851_s2 + $0x158] sm:$0xff]  }
  0x1a   : > { %3745 = vmatpush3.bf16.msra.mxu0 %v4339_v7  ;;  %4301 = vmatpush3.bf16.msra.mxu1 %v4339_v7  ;;  %v4712_v40 = vld [vmem:[%s4629_s26 + $0x48] ss:$12 sps:$4 sm:$0xff]   ;;  %v4382_v43 = vld [vmem:[%s5851_s2 + $0x80] sm:$0xff]   ;;  %v4388_v49 = vld [vmem:[%s5851_s2 + $0x138] sm:$0xff]  }
  0x1b   : > { %3746 = vmatprep.subr.bf16.mxu0 %v4340_v8  ;;  %4294 = vmatprep.subr.bf16.mxu1 %v4340_v8  ;;  %v4379_v42 = vld [vmem:[%s4629_s26 + $0x168] ss:$12 sps:$4 sm:$0xff]   ;;  %v4722_v44 = vld [vmem:[%s4629_s26 + $0x64] ss:$12 sps:$4 sm:$0xff]   ;;  %v4731_v47 = vld [vmem:[%s4629_s26 + $0x60] ss:$12 sps:$4 sm:$0xff]  }
  0x1c   : > { %v4385_v46 = vld [vmem:[%s4629_s26 + $0x8] ss:$12 sps:$4 sm:$0xff]   ;;  %v4387_v48 = vld [vmem:[%s4629_s26 + $0x20] ss:$12 sps:$4 sm:$0xff]   ;;  %v4389_v50 = vld [vmem:[%s5851_s2 + $0xf8] sm:$0xff]  }
  0x1d   : > { %v4413_v51 = vld [vmem:[%s5851_s2 + $0x150] sm:$0xff]   ;;  %v4744_v52 = vld [vmem:[%s4629_s26 + $0x7c] ss:$12 sps:$4 sm:$0xff]   ;;  %v4393_v53 = vld [vmem:[%s4629_s26 + $0x38] ss:$12 sps:$4 sm:$0xff]  }
  0x1e   : > { %3747 = vmatpush3.bf16.msra.mxu0 %v4341_v9  ;;  %4302 = vmatpush3.bf16.msra.mxu1 %v4341_v9  ;;  %v4396_v54 = vld [vmem:[%s5851_s2 + $0x130] sm:$0xff]   ;;  %v4756_v56 = vld [vmem:[%s4629_s26 + $0x78] ss:$12 sps:$4 sm:$0xff]   ;;  %v4403_v57 = vld [vmem:[%s5851_s2 + $0x128] sm:$0xff]  }
  0x1f   : > { %3748 = vmatprep.subr.bf16.mxu0 %v4342_v10  ;;  %4295 = vmatprep.subr.bf16.mxu1 %v4342_v10  ;;  %v4397_v55 = vld [vmem:[%s5851_s2 + $0xf0] sm:$0xff]   ;;  %v4404_v61 = vld [vmem:[%s5851_s2 + $0xe8] sm:$0xff]   ;;  %v4411_v62 = vld [vmem:[%s5851_s2 + $0x120] sm:$0xff]  }
  0x20   : > { %v4395_v58 = vld [vmem:[%s4629_s26 + $0x50] ss:$12 sps:$4 sm:$0xff]   ;;  %v4763_v59 = vld [vmem:[%s4629_s26 + $0x94] ss:$12 sps:$4 sm:$0xff]   ;;  %v4428_v63 = vld [vmem:[%s5851_s2 + $0x148] sm:$0xff]  }
  0x21   : > { %v4400_v60 = vld [vmem:[%s4629_s26 + $0x68] ss:$12 sps:$4 sm:$0xff]   ;;  %v4778_v0 = vld [vmem:[%s4629_s26 + $0x90] ss:$12 sps:$4 sm:$0xff]   ;;  %v4402_v1 = vld [vmem:[%s4629_s26 + $0x80] ss:$12 sps:$4 sm:$0xff]  }
  0x22   : > { %3749 = vmatpush3.bf16.msra.mxu0 %v4343_v13  ;;  %4303 = vmatpush3.bf16.msra.mxu1 %v4343_v13  ;;  %v4412_v2 = vld [vmem:[%s5851_s2 + $0xe0] sm:$0xff]   ;;  %v4785_v3 = vld [vmem:[%s4629_s26 + $0xac] ss:$12 sps:$4 sm:$0xff]   ;;  %v4426_v8 = vld [vmem:[%s5851_s2 + $0x110] sm:$0xff]  }
  0x23   : > { %3750 = vmatprep.subr.bf16.mxu0 %v4344_v14  ;;  %4296 = vmatprep.subr.bf16.mxu1 %v4344_v14  ;;  %v4419_v4 = vld [vmem:[%s5851_s2 + $0x118] sm:$0xff]   ;;  %v4436_v6 = vld [vmem:[%s5851_s2 + $0x140] sm:$0xff]   ;;  %v4803_v9 = vld [vmem:[%s4629_s26 + $0xa8] ss:$12 sps:$4 sm:$0xff]  }
  0x24   : > { %v4408_v5 = vld [vmem:[%s4629_s26 + $0x98] ss:$12 sps:$4 sm:$0xff]   ;;  %v4410_v10 = vld [vmem:[%s4629_s26 + $0xb0] ss:$12 sps:$4 sm:$0xff]   ;;  %v4434_v13 = vld [vmem:[%s5851_s2 + $0x108] sm:$0xff]  }
  0x25   : > { %v4420_v7 = vld [vmem:[%s5851_s2 + $0xd8] sm:$0xff]   ;;  %v4427_v11 = vld [vmem:[%s5851_s2 + $0xd0] sm:$0xff]  }
  0x26   : > { %3751 = vmatpush3.bf16.msra.mxu0 %v4345_v15  ;;  %4304 = vmatpush3.bf16.msra.mxu1 %v4345_v15  ;;  %v4810_v12 = vld [vmem:[%s4629_s26 + $0xc4] ss:$12 sps:$4 sm:$0xff]   ;;  %v4416_v14 = vld [vmem:[%s4629_s26 + $0xc8] ss:$12 sps:$4 sm:$0xff]  }
  0x27   : > { %3752 = vmatprep.subr.bf16.mxu0 %v4346_v16  ;;  %4297 = vmatprep.subr.bf16.mxu1 %v4346_v16  ;;  %v4435_v15 = vld [vmem:[%s5851_s2 + $0xc8] sm:$0xff]   ;;  %v4442_v16 = vld [vmem:[%s5851_s2 + $0x100] sm:$0xff]  }
  0x2a   : > { %3753 = vmatpush3.bf16.msra.mxu0 %v4347_v17  ;;  %4305 = vmatpush3.bf16.msra.mxu1 %v4347_v17  ;;  %v4447_v17 = vld [vmem:[%s5851_s2 + $0x1f8] sm:$0xff]  }
  0x2b   : > { %4146 = vmatprep.subr.bf16.mxu1 %v4354_v18  ;;  %4194 = vmatprep.subr.bf16.mxu0 %v4355_v19 }
  0x2d   : > { %879 = vmatmul.mubr.bf16.vlgmr.msra.gmra.mxu0 %v4348_v20  ;;  %975 = vmatmul.mubr.bf16.vlgmr.msra.gmra.mxu1 %v4351_v21  ;;  %v4443_v20 = vld [vmem:[%s5851_s2 + $0xc0] sm:$0xff]   ;;  %v4446_v21 = vld [vmem:[%s5851_s2 + $0x238] sm:$0xff]  }
  0x2e   : > { %4147 = vmatpush3.bf16.msra.mxu1 %v4354_v18  ;;  %4195 = vmatpush3.bf16.msra.mxu0 %v4355_v19  ;;  %v4828_v18 = vld [vmem:[%s4629_s26 + $0xc0] ss:$12 sps:$4 sm:$0xff]  }
  0x2f   : > { %4148 = vmatprep.subr.bf16.mxu1 %v4356_v22  ;;  %886 = vmatprep.mubr.bf16.mxu0 %v4666_v23  ;;  %v4418_v19 = vld [vmem:[%s4629_s26 + $0xe0] ss:$12 sps:$4 sm:$0xff]  }
  0x30   : > { %982 = vmatprep.mubr.bf16.mxu1 %v4359_v24  ;;  %4196 = vmatprep.subr.bf16.mxu0 %v4365_v25  ;;  %v4423_v24 = vld [vmem:[%s4629_s26 + $0xf8] ss:$12 sps:$4 sm:$0xff]  }
  0x32   : > { %4149 = vmatpush3.bf16.msra.mxu1 %v4356_v22  ;;  %4197 = vmatpush3.bf16.msra.mxu0 %v4365_v25  ;;  %v4838_v22 = vld [vmem:[%s4629_s26 + $0xdc] ss:$12 sps:$4 sm:$0xff]   ;;  %v4844_v25 = vld [vmem:[%s4629_s26 + $0xd8] ss:$12 sps:$4 sm:$0xff]  }
  0x33   : > { %4150 = vmatprep.subr.bf16.mxu1 %v4363_v26  ;;  %4198 = vmatprep.subr.bf16.mxu0 %v4381_v27 }
  0x35   : > { %887 = vmatmul.mubr.bf16.gmra.mxu0 %v4680_v28  ;;  %983 = vmatmul.mubr.bf16.gmra.mxu1 %v4362_v29  ;;  %v4431_v29 = vld [vmem:[%s4629_s26 + $0x128] ss:$12 sps:$4 sm:$0xff]  }
  0x36   : > { %4151 = vmatpush3.bf16.msra.mxu1 %v4363_v26  ;;  %894 = vmatprep.mubr.bf16.mxu0 %v4687_v31  ;;  %v4425_v26 = vld [vmem:[%s4629_s26 + $0x110] ss:$12 sps:$4 sm:$0xff]  }
  0x37   : > { %4152 = vmatprep.subr.bf16.mxu1 %v4364_v30  ;;  %990 = vmatprep.mubr.bf16.mxu1 %v4368_v32  ;;  %v4433_v32 = vld [vmem:[%s4629_s26 + $0x140] ss:$12 sps:$4 sm:$0xff]  }
  0x38   : > { %4199 = vmatpush3.bf16.msra.mxu0 %v4381_v27  ;;  %v4848_v27 = vld [vmem:[%s4629_s26 + $0xf4] ss:$12 sps:$4 sm:$0xff]  }
  0x39   : > { %4200 = vmatprep.subr.bf16.mxu0 %v4390_v33 }
  0x3a   : > { %4153 = vmatpush3.bf16.msra.mxu1 %v4364_v30  ;;  %v4854_v30 = vld [vmem:[%s4629_s26 + $0xf0] ss:$12 sps:$4 sm:$0xff]  }
  0x3b   : > { %4154 = vmatprep.subr.bf16.mxu1 %v4372_v35 }
  0x3c   : > { %4201 = vmatpush3.bf16.msra.mxu0 %v4390_v33  ;;  %v4858_v33 = vld [vmem:[%s4629_s26 + $0x10c] ss:$12 sps:$4 sm:$0xff]  }
  0x3d   : > { %895 = vmatmul.mubr.bf16.gmra.mxu0 %v4696_v34  ;;  %991 = vmatmul.mubr.bf16.gmra.mxu1 %v4371_v36  ;;  %v4864_v36 = vld [vmem:[%s4629_s26 + $0x108] ss:$12 sps:$4 sm:$0xff]  }
  0x3e   : > { %4155 = vmatpush3.bf16.msra.mxu1 %v4372_v35  ;;  %902 = vmatprep.mubr.bf16.mxu0 %v4706_v38  ;;  %v4439_v35 = vld [vmem:[%s4629_s26 + $0x158] ss:$12 sps:$4 sm:$0xff]  }
  0x3f   : > { %4156 = vmatprep.subr.bf16.mxu1 %v4373_v37  ;;  %998 = vmatprep.mubr.bf16.mxu1 %v4376_v39  ;;  %v4444_v39 = vld [vmem:[%s4629_s26 + $0x20] ss:$12 sps:$4 sm:$0xff]  }
  0x40   : > { %4202 = vmatprep.subr.bf16.mxu0 %v4405_v45 }
  0x41   : > { %4203 = vmatpush3.bf16.msra.mxu0 %v4405_v45  ;;  %v4451_v45 = vld [vmem:[%s5851_s2 + $0x1f0] sm:$0xff]  }
  0x42   : > { %4157 = vmatpush3.bf16.msra.mxu1 %v4373_v37  ;;  %4204 = vmatprep.subr.bf16.mxu0 %v4413_v51  ;;  %v4441_v37 = vld [vmem:[%s4629_s26 + $0x170] ss:$12 sps:$4 sm:$0xff]  }
  0x43   : > { %4158 = vmatprep.subr.bf16.mxu1 %v4380_v41 }
  0x45   : > { %903 = vmatmul.mubr.bf16.gmra.mxu0 %v4712_v40  ;;  %999 = vmatmul.mubr.bf16.gmra.mxu1 %v4379_v42  ;;  %v4448_v42 = vld [vmem:[%s5851_s2 + $0x1b8] sm:$0xff]  }
  0x46   : > { %4159 = vmatpush3.bf16.msra.mxu1 %v4380_v41  ;;  %910 = vmatprep.mubr.bf16.mxu0 %v4722_v44  ;;  %v4445_v41 = vld [vmem:[%s4629_s26 + $0x38] ss:$12 sps:$4 sm:$0xff]  }
  0x47   : > { %4160 = vmatprep.subr.bf16.mxu1 %v4382_v43  ;;  %4162 = vmatprep.mubr.bf16.mxu1 %v4385_v46  ;;  %v4455_v46 = vld [vmem:[%s5851_s2 + $0x230] sm:$0xff]  }
  0x48   : > { %4205 = vmatpush3.bf16.msra.mxu0 %v4413_v51  ;;  %v4457_v51 = vld [vmem:[%s5851_s2 + $0x1a8] sm:$0xff]  }
  0x49   : > { %4206 = vmatprep.subr.bf16.mxu0 %v4428_v63 }
  0x4a   : > { %4161 = vmatpush3.bf16.msra.mxu1 %v4382_v43  ;;  %v4449_v43 = vld [vmem:[%s4629_s26 + $0x50] ss:$12 sps:$4 sm:$0xff]  }
  0x4b   : > { %3874 = vmatprep.subr.bf16.mxu1 %v4388_v49  ;;  %v4450_v49 = vld [vmem:[%s4629_s26 + $0x68] ss:$12 sps:$4 sm:$0xff]  }
  0x4c   : > { %4207 = vmatpush3.bf16.msra.mxu0 %v4428_v63  ;;  %v4469_v63 = vld [vmem:[%s5851_s2 + $0x1d0] sm:$0xff]  }
  0x4d   : > { %911 = vmatmul.mubr.bf16.gmra.mxu0 %v4731_v47  ;;  %4163 = vmatmul.mubr.bf16.vlgmr.msra.gmra.mxu1 %v4387_v48  ;;  %v4456_v48 = vld [vmem:[%s5851_s2 + $0x1e8] sm:$0xff]  }
  0x4e   : > { %3875 = vmatpush3.bf16.msra.mxu1 %v4389_v50  ;;  %918 = vmatprep.mubr.bf16.mxu0 %v4744_v52  ;;  %v4464_v50 = vld [vmem:[%s5851_s2 + $0x228] sm:$0xff]  }
  0x4f   : > { %4166 = vmatprep.mubr.bf16.mxu1 %v4393_v53  ;;  %3876 = vmatprep.subr.bf16.mxu1 %v4396_v54  ;;  %v4460_v53 = vld [vmem:[%s5851_s2 + $0x1e0] sm:$0xff]  }
  0x50   : > { %4208 = vmatprep.subr.bf16.mxu0 %v4436_v6  ;;  %v4473_v54 = vld [vmem:[%s5851_s2 + $0x220] sm:$0xff]  }
  0x51   : > { %4209 = vmatpush3.bf16.msra.mxu0 %v4436_v6  ;;  %v4459_v6 = vld [vmem:[%s4629_s26 + $0xc8] ss:$12 sps:$4 sm:$0xff]  }
  0x52   : > { %3877 = vmatpush3.bf16.msra.mxu1 %v4397_v55  ;;  %4010 = vmatprep.subr.bf16.mxu0 %v4447_v17  ;;  %v4461_v55 = vld [vmem:[%s5851_s2 + $0x1a0] sm:$0xff]  }
  0x53   : > { %3878 = vmatprep.subr.bf16.mxu1 %v4403_v57  ;;  %v4465_v57 = vld [vmem:[%s5851_s2 + $0x1d8] sm:$0xff]   ;;  %v4471_v17 = vld [vmem:[%s4629_s26 + $0x140] ss:$12 sps:$4 sm:$0xff]  }
  0x55   : > { %919 = vmatmul.mubr.bf16.gmra.mxu0 %v4756_v56  ;;  %4167 = vmatmul.mubr.bf16.gmra.mxu1 %v4395_v58  ;;  %v4480_v58 = vld [vmem:[%s5851_s2 + $0x218] sm:$0xff]  }
  0x56   : > { %926 = vmatprep.mubr.bf16.mxu0 %v4763_v59  ;;  %4170 = vmatprep.mubr.bf16.mxu1 %v4400_v60  ;;  %v4454_v60 = vld [vmem:[%s4629_s26 + $0x98] ss:$12 sps:$4 sm:$0xff]  }
  0x57   : > { %3879 = vmatpush3.bf16.msra.mxu1 %v4404_v61  ;;  %v4458_v61 = vld [vmem:[%s4629_s26 + $0xb0] ss:$12 sps:$4 sm:$0xff]  }
  0x58   : > { %3880 = vmatprep.subr.bf16.mxu1 %v4411_v62  ;;  %v4466_v62 = vld [vmem:[%s5851_s2 + $0x198] sm:$0xff]  }
  0x5b   : > { %3881 = vmatpush3.bf16.msra.mxu1 %v4412_v2  ;;  %v4470_v2 = vld [vmem:[%s5851_s2 + $0x190] sm:$0xff]  }
  0x5c   : > { %3882 = vmatprep.subr.bf16.mxu1 %v4419_v4  ;;  %v4474_v4 = vld [vmem:[%s5851_s2 + $0x1c8] sm:$0xff]  }
  0x5d   : > { %927 = vmatmul.mubr.bf16.gmra.mxu0 %v4778_v0  ;;  %4171 = vmatmul.mubr.bf16.gmra.mxu1 %v4402_v1  ;;  %v4481_v1 = vld [vmem:[%s5851_s2 + $0x210] sm:$0xff]  }
  0x5e   : > { %934 = vmatprep.mubr.bf16.mxu0 %v4785_v3  ;;  %4174 = vmatprep.mubr.bf16.mxu1 %v4408_v5  ;;  %v4488_v5 = vld [vmem:[%s5851_s2 + $0x208] sm:$0xff]  }
  0x5f   : > { %3883 = vmatpush3.bf16.msra.mxu1 %v4420_v7  ;;  %v4462_v7 = vld [vmem:[%s4629_s26 + $0xe0] ss:$12 sps:$4 sm:$0xff]  }
  0x60   : > { %3884 = vmatprep.subr.bf16.mxu1 %v4426_v8  ;;  %v4475_v8 = vld [vmem:[%s5851_s2 + $0x188] sm:$0xff]  }
  0x63   : > { %3885 = vmatpush3.bf16.msra.mxu1 %v4427_v11  ;;  %v4495_v11 = vld [vmem:[%s5851_s2 + $0x200] sm:$0xff]  }
  0x64   : > { %3886 = vmatprep.subr.bf16.mxu1 %v4434_v13  ;;  %v4479_v13 = vld [vmem:[%s5851_s2 + $0x180] sm:$0xff]  }
  0x65   : > { %935 = vmatmul.mubr.bf16.gmra.mxu0 %v4803_v9  ;;  %4175 = vmatmul.mubr.bf16.gmra.mxu1 %v4410_v10  ;;  %v4478_v10 = vld [vmem:[%s5851_s2 + $0x1c0] sm:$0xff]  }
  0x66   : > { %942 = vmatprep.mubr.bf16.mxu0 %v4810_v12  ;;  %4178 = vmatprep.mubr.bf16.mxu1 %v4416_v14  ;;  %v4463_v14 = vld [vmem:[%s4629_s26 + $0xf8] ss:$12 sps:$4 sm:$0xff]  }
  0x67   : > { %3887 = vmatpush3.bf16.msra.mxu1 %v4435_v15  ;;  %v4467_v15 = vld [vmem:[%s4629_s26 + $0x110] ss:$12 sps:$4 sm:$0xff]  }
  0x68   : > { %3888 = vmatprep.subr.bf16.mxu1 %v4442_v16  ;;  %v4468_v16 = vld [vmem:[%s4629_s26 + $0x128] ss:$12 sps:$4 sm:$0xff]  }
  0x6b   : > { %3889 = vmatpush3.bf16.msra.mxu1 %v4443_v20  ;;  %v4476_v20 = vld [vmem:[%s4629_s26 + $0x170] ss:$12 sps:$4 sm:$0xff]  }
  0x6c   : > { %4242 = vmatprep.subr.bf16.mxu1 %v4446_v21 }
  0x6d   : > { %943 = vmatmul.mubr.bf16.gmra.mxu0 %v4828_v18  ;;  %4179 = vmatmul.mubr.bf16.gmra.mxu1 %v4418_v19  ;;  %v4472_v19 = vld [vmem:[%s4629_s26 + $0x158] ss:$12 sps:$4 sm:$0xff]  }
  0x6e   : > { %950 = vmatprep.mubr.bf16.mxu0 %v4838_v22  ;;  %4182 = vmatprep.mubr.bf16.mxu1 %v4423_v24  ;;  %v4977_v24 = vld [vmem:[%s4629_s26 + $0x124] ss:$12 sps:$4 sm:$0xff]  }
  0x75   : > { %951 = vmatmul.mubr.bf16.gmra.mxu0 %v4844_v25  ;;  %4183 = vmatmul.mubr.bf16.gmra.mxu1 %v4425_v26 }
  0x76   : > { %958 = vmatprep.mubr.bf16.mxu0 %v4848_v27  ;;  %4186 = vmatprep.mubr.bf16.mxu1 %v4431_v29 }
  0x7d   : > { %959 = vmatmul.mubr.bf16.gmra.mxu0 %v4854_v30  ;;  %4187 = vmatmul.mubr.bf16.gmra.mxu1 %v4433_v32 }
  0x7e   : > { %966 = vmatprep.mubr.bf16.mxu0 %v4858_v33  ;;  %4190 = vmatprep.mubr.bf16.mxu1 %v4439_v35  ;;  %v5008_v35 = vld [vmem:[%s4629_s26 + $0x150] ss:$12 sps:$4 sm:$0xff]  }
  0x85   : > { %967 = vmatmul.mubr.bf16.gmra.mxu0 %v4864_v36  ;;  %4191 = vmatmul.mubr.bf16.gmra.mxu1 %v4441_v37  ;;  %v5011_v37 = vld [vmem:[%s4629_s26 + $0x16c] ss:$12 sps:$4 sm:$0xff]  }
  0x86   : > { %1745 = vmatprep.mubr.bf16.mxu1 %v4666_v23  ;;  %4210 = vmatprep.mubr.bf16.mxu0 %v4444_v39  ;;  %v4452_v23 = vld [vmem:[%s5851_s2 + $0x1b0] sm:$0xff]  }
  0x8d   : > { %1746 = vmatmul.mubr.bf16.vlgmr.msra.gmra.mxu1 %v4680_v28  ;;  %4211 = vmatmul.mubr.bf16.vlgmr.msra.gmra.mxu0 %v4445_v41  ;;  %v4453_v28 = vld [vmem:[%s4629_s26 + $0x80] ss:$12 sps:$4 sm:$0xff]  }
  0x8e   : > { %4243 = vmatpush3.bf16.msra.mxu1 %v4446_v21  ;;  %4011 = vmatpush3.bf16.msra.mxu0 %v4448_v42  ;;  %v4477_v21 = vld [vmem:[%s4629_s26 + $0x188] ss:$12 sps:$4 sm:$0xff]  }
  0x8f   : > { %1753 = vmatprep.mubr.bf16.mxu1 %v4687_v31  ;;  %4214 = vmatprep.mubr.bf16.mxu0 %v4449_v43 }
  0x90   : > { %4012 = vmatprep.subr.bf16.mxu0 %v4451_v45  ;;  %4244 = vmatprep.subr.bf16.mxu1 %v4455_v46 }
  0x92   : > { %4013 = vmatpush3.bf16.msra.mxu0 %v4452_v23  ;;  %4245 = vmatpush3.bf16.msra.mxu1 %v4455_v46 }
  0x93   : > { %4014 = vmatprep.subr.bf16.mxu0 %v4456_v48  ;;  %4246 = vmatprep.subr.bf16.mxu1 %v4464_v50 }
  0x95   : > { %1754 = vmatmul.mubr.bf16.gmra.mxu1 %v4696_v34  ;;  %4215 = vmatmul.mubr.bf16.gmra.mxu0 %v4450_v49 }
  0x96   : > { %1761 = vmatprep.mubr.bf16.mxu1 %v4706_v38  ;;  %4218 = vmatprep.mubr.bf16.mxu0 %v4453_v28  ;;  %v5024_v28 = vld [vmem:[%s4629_s26 + $0x168] ss:$12 sps:$4 sm:$0xff]  }
  0x97   : > { %4015 = vmatpush3.bf16.msra.mxu0 %v4457_v51  ;;  %4247 = vmatpush3.bf16.msra.mxu1 %v4464_v50  ;;  %v5027_v51 = vld [vmem:[%s4629_s26 + $0x184] ss:$12 sps:$4 sm:$0xff]  }
  0x98   : > { %4016 = vmatprep.subr.bf16.mxu0 %v4460_v53  ;;  %4248 = vmatprep.subr.bf16.mxu1 %v4473_v54 }
  0x9b   : > { %4017 = vmatpush3.bf16.msra.mxu0 %v4461_v55  ;;  %4249 = vmatpush3.bf16.msra.mxu1 %v4473_v54 }
  0x9c   : > { %4018 = vmatprep.subr.bf16.mxu0 %v4465_v57  ;;  %4250 = vmatprep.subr.bf16.mxu1 %v4480_v58 }
  0x9d   : > { %1762 = vmatmul.mubr.bf16.gmra.mxu1 %v4712_v40  ;;  %4219 = vmatmul.mubr.bf16.gmra.mxu0 %v4454_v60 }
  0x9e   : > { %1769 = vmatprep.mubr.bf16.mxu1 %v4722_v44  ;;  %4222 = vmatprep.mubr.bf16.mxu0 %v4458_v61 }
  0x9f   : > { %4019 = vmatpush3.bf16.msra.mxu0 %v4466_v62  ;;  %4251 = vmatpush3.bf16.msra.mxu1 %v4480_v58 }
  0xa0   : > { %4020 = vmatprep.subr.bf16.mxu0 %v4469_v63  ;;  %4252 = vmatprep.subr.bf16.mxu1 %v4481_v1 }
  0xa3   : > { %4021 = vmatpush3.bf16.msra.mxu0 %v4470_v2  ;;  %4253 = vmatpush3.bf16.msra.mxu1 %v4481_v1  ;;  %v5038_v2 = vld [vmem:[%s4629_s26 + $0x180] ss:$12 sps:$4 sm:$0xff]  }
  0xa4   : > { %4022 = vmatprep.subr.bf16.mxu0 %v4474_v4  ;;  %4254 = vmatprep.subr.bf16.mxu1 %v4488_v5  ;;  %v4499_v4 = vld [vmem:[%s4629_s26 + $0x38] ss:$12 sps:$4 sm:$0xff]  }
  0xa5   : > { %1770 = vmatmul.mubr.bf16.gmra.mxu1 %v4731_v47  ;;  %4223 = vmatmul.mubr.bf16.gmra.mxu0 %v4459_v6 }
  0xa6   : > { %1777 = vmatprep.mubr.bf16.mxu1 %v4744_v52  ;;  %4226 = vmatprep.mubr.bf16.mxu0 %v4462_v7 }
  0xa7   : > { %4023 = vmatpush3.bf16.msra.mxu0 %v4475_v8  ;;  %4255 = vmatpush3.bf16.msra.mxu1 %v4488_v5 }
  0xa8   : > { %4024 = vmatprep.subr.bf16.mxu0 %v4478_v10  ;;  %4256 = vmatprep.subr.bf16.mxu1 %v4495_v11 }
  0xab   : > { %4025 = vmatpush3.bf16.msra.mxu0 %v4479_v13  ;;  %4257 = vmatpush3.bf16.msra.mxu1 %v4495_v11 }
  0xad   : > { %1778 = vmatmul.mubr.bf16.gmra.mxu1 %v4756_v56  ;;  %4227 = vmatmul.mubr.bf16.gmra.mxu0 %v4463_v14 }
  0xae   : > { %1785 = vmatprep.mubr.bf16.mxu1 %v4763_v59  ;;  %4230 = vmatprep.mubr.bf16.mxu0 %v4467_v15 }
  0xb5   : > { %1786 = vmatmul.mubr.bf16.gmra.mxu1 %v4778_v0  ;;  %4231 = vmatmul.mubr.bf16.gmra.mxu0 %v4468_v16 }
  0xb6   : > { %1793 = vmatprep.mubr.bf16.mxu1 %v4785_v3  ;;  %4234 = vmatprep.mubr.bf16.mxu0 %v4471_v17  ;;  %v4500_v17 = vld [vmem:[%s4629_s26 + $0x50] ss:$12 sps:$4 sm:$0xff]  }
  0xbd   : > { %1794 = vmatmul.mubr.bf16.gmra.mxu1 %v4803_v9  ;;  %4235 = vmatmul.mubr.bf16.gmra.mxu0 %v4472_v19  ;;  %v4501_v19 = vld [vmem:[%s4629_s26 + $0x68] ss:$12 sps:$4 sm:$0xff]  }
  0xbe   : > { %1801 = vmatprep.mubr.bf16.mxu1 %v4810_v12  ;;  %4238 = vmatprep.mubr.bf16.mxu0 %v4476_v20 }
  0xc5   : > { %1802 = vmatmul.mubr.bf16.gmra.mxu1 %v4828_v18  ;;  %4239 = vmatmul.mubr.bf16.gmra.mxu0 %v4477_v21 }
  0xc6   : > { %1809 = vmatprep.mubr.bf16.mxu1 %v4838_v22  ;;  %2612 = vmatprep.mubr.bf16.mxu0 %v4687_v31  ;;  %v4984_v31 = vld [vmem:[%s4629_s26 + $0x120] ss:$12 sps:$4 sm:$0xff]  }
  0xcd   : > { %1810 = vmatmul.mubr.bf16.gmra.mxu1 %v4844_v25  ;;  %2613 = vmatmul.mubr.bf16.vlgmr.msra.gmra.mxu0 %v4696_v34  ;;  %v4987_v34 = vld [vmem:[%s4629_s26 + $0x13c] ss:$12 sps:$4 sm:$0xff]  }
  0xce   : > { %1817 = vmatprep.mubr.bf16.mxu1 %v4848_v27  ;;  %2620 = vmatprep.mubr.bf16.mxu0 %v4706_v38  ;;  %v4994_v38 = vld [vmem:[%s4629_s26 + $0x138] ss:$12 sps:$4 sm:$0xff]  }
  0xd5   : > { %1818 = vmatmul.mubr.bf16.gmra.mxu1 %v4854_v30  ;;  %2621 = vmatmul.mubr.bf16.gmra.mxu0 %v4712_v40  ;;  %v4997_v40 = vld [vmem:[%s4629_s26 + $0x154] ss:$12 sps:$4 sm:$0xff]  }
  0xd6   : > { %1825 = vmatprep.mubr.bf16.mxu1 %v4858_v33  ;;  %2628 = vmatprep.mubr.bf16.mxu0 %v4722_v44 }
  0xdd   : > { %1826 = vmatmul.mubr.bf16.gmra.mxu1 %v4864_v36  ;;  %2629 = vmatmul.mubr.bf16.gmra.mxu0 %v4731_v47 }
  0xde   : > { %1833 = vmatprep.mubr.bf16.mxu1 %v4977_v24  ;;  %2636 = vmatprep.mubr.bf16.mxu0 %v4744_v52 }
  0xe5   : > { %1834 = vmatmul.mubr.bf16.gmra.mxu1 %v4984_v31  ;;  %2637 = vmatmul.mubr.bf16.gmra.mxu0 %v4756_v56 }
  0xe6   : > { %1841 = vmatprep.mubr.bf16.mxu1 %v4987_v34  ;;  %2644 = vmatprep.mubr.bf16.mxu0 %v4763_v59 }
  0xed   : > { %v3754_v44 = vpop.f32.mrf.mxu0  ;;  %v3826_v47 = vpop.f32.mrf.mxu1  ;;  %1842 = vmatmul.mubr.bf16.gmra.mxu1 %v4994_v38  ;;  %2645 = vmatmul.mubr.bf16.gmra.mxu0 %v4778_v0 }
  0xee   : > { %1849 = vmatprep.mubr.bf16.mxu1 %v4997_v40  ;;  %2652 = vmatprep.mubr.bf16.mxu0 %v4785_v3 }
  0xef   : > { %v3755_v52 = vpop.f32.mrf.mxu0  ;;  %v3827_v56 = vpop.f32.mrf.mxu1 }
  0xf0   : > { %v5003_v26 = vadd.f32 %v3755_v52, %v3754_v44  ;;  %v5005_v59 = vadd.f32 %v3827_v56, %v3826_v47 }
  0xf1   : > { %v3757_v29 = vpop.f32.mrf.mxu0  ;;  %v3829_v32 = vpop.f32.mrf.mxu1 }
  0xf3   : > { %v3758_v39 = vpop.f32.mrf.mxu0  ;;  %v3830_v41 = vpop.f32.mrf.mxu1 }
  0xf4   : > { %v5013_v0 = vadd.f32 %v3758_v39, %v3757_v29  ;;  %v5015_v42 = vadd.f32 %v3830_v41, %v3829_v32 }
  0xf5   : > { %v3760_v3 = vpop.f32.mrf.mxu0  ;;  %v3832_v43 = vpop.f32.mrf.mxu1  ;;  %1850 = vmatmul.mubr.bf16.gmra.mxu1 %v5008_v35  ;;  %2653 = vmatmul.mubr.bf16.gmra.mxu0 %v4803_v9 }
  0xf6   : > { %1857 = vmatprep.mubr.bf16.mxu1 %v5011_v37  ;;  %2660 = vmatprep.mubr.bf16.mxu0 %v4810_v12 }
  0xf7   : > { %v3761_v45 = vpop.f32.mrf.mxu0  ;;  %v3833_v46 = vpop.f32.mrf.mxu1 }
  0xf8   : > { %v3762_v23 = vadd.f32 %v3761_v45, %v3760_v3  ;;  %v5021_v48 = vadd.f32 %v3833_v46, %v3832_v43  ;;  %v4502_v43 = vld [vmem:[%s4629_s26 + $0x80] ss:$12 sps:$4 sm:$0xff]   ;;  %v4503_v46 = vld [vmem:[%s4629_s26 + $0x98] ss:$12 sps:$4 sm:$0xff]  }
  0xf9   : > { %v3763_v49 = vpop.f32.mrf.mxu0  ;;  %v3835_v50 = vpop.f32.mrf.mxu1 }
  0xfb   : > { %v3764_v53 = vpop.f32.mrf.mxu0  ;;  %v3836_v54 = vpop.f32.mrf.mxu1 }
  0xfc   : > { %v3765_v9 = vadd.f32 %v3764_v53, %v3763_v49  ;;  %v5029_v55 = vadd.f32 %v3836_v54, %v3835_v50 }
  0xfd   : > { %v3766_v57 = vpop.f32.mrf.mxu0  ;;  %v3838_v12 = vpop.f32.mrf.mxu1  ;;  %1858 = vmatmul.mubr.bf16.gmra.mxu1 %v5024_v28  ;;  %2661 = vmatmul.mubr.bf16.gmra.mxu0 %v4828_v18 }
  0xfe   : > { %1865 = vmatprep.mubr.bf16.mxu1 %v5027_v51  ;;  %2668 = vmatprep.mubr.bf16.mxu0 %v4838_v22 }
  0xff   : > { %v3767_v58 = vpop.f32.mrf.mxu0  ;;  %v3839_v60 = vpop.f32.mrf.mxu1 }
 0x100   : > { %v3768_v61 = vadd.f32 %v3767_v58, %v3766_v57  ;;  %v5035_v62 = vadd.f32 %v3839_v60, %v3838_v12 }
 0x101   : > { %v3769_v63 = vpop.f32.mrf.mxu0  ;;  %v3841_v1 = vpop.f32.mrf.mxu1 }
 0x103   : > { %v3770_v5 = vpop.f32.mrf.mxu0  ;;  %v3842_v6 = vpop.f32.mrf.mxu1 }
 0x104   : > { %v3771_v7 = vadd.f32 %v3770_v5, %v3769_v63  ;;  %v5041_v18 = vadd.f32 %v3842_v6, %v3841_v1  ;;  %v4505_v1 = vld [vmem:[%s4629_s26 + $0xc8] ss:$12 sps:$4 sm:$0xff]  }
 0x105   : > { %v3772_v8 = vpop.f32.mrf.mxu0  ;;  %v3844_v10 = vpop.f32.mrf.mxu1  ;;  %1866 = vmatmul.mubr.bf16.gmra.mxu1 %v5038_v2  ;;  %2669 = vmatmul.mubr.bf16.gmra.mxu0 %v4844_v25 }
 0x106   : > { %2676 = vmatprep.mubr.bf16.mxu0 %v4848_v27  ;;  %4258 = vmatprep.mubr.bf16.mxu1 %v4499_v4 }
 0x107   : > { %v3773_v22 = vpop.f32.mrf.mxu0  ;;  %v3845_v11 = vpop.f32.mrf.mxu1 }
 0x108   : > { %v3774_v13 = vadd.f32 %v3773_v22, %v3772_v8  ;;  %v5046_v14 = vadd.f32 %v3845_v11, %v3844_v10 }
 0x109   : > { %v3775_v15 = vpop.f32.mrf.mxu0  ;;  %v3847_v16 = vpop.f32.mrf.mxu1 }
 0x10b   : > { %v3776_v20 = vpop.f32.mrf.mxu0  ;;  %v3848_v21 = vpop.f32.mrf.mxu1 }
 0x10c   : > { %v3777_v44 = vadd.f32 %v3776_v20, %v3775_v15  ;;  %v5050_v47 = vadd.f32 %v3848_v21, %v3847_v16 }
 0x10d   : > { %v3778_v25 = vpop.f32.mrf.mxu0  ;;  %v4164_v52 = vpop.f32.mrf.mxu1  ;;  %2677 = vmatmul.mubr.bf16.gmra.mxu0 %v4854_v30  ;;  %4259 = vmatmul.mubr.bf16.vlgmr.msra.gmra.mxu1 %v4500_v17 }
 0x10e   : > { %v5053_v27 = vadd.f32 %v4164_v52, %v3762_v23  ;;  %2684 = vmatprep.mubr.bf16.mxu0 %v4858_v33  ;;  %4262 = vmatprep.mubr.bf16.mxu1 %v4501_v19  ;;  %v4507_v19 = vld [vmem:[%s4629_s26 + $0xf8] ss:$12 sps:$4 sm:$0xff]  }
 0x10f   : > { %v3779_v56 = vpop.f32.mrf.mxu0  ;;  %v1041_v29 = vpop.f32.mrf.mxu1 }
 0x110   : > { %v3780_v32 = vadd.f32 %v3779_v56, %v3778_v25  ;;  %v5057_v39 = vadd.f32 %v5003_v26, %v1041_v29 }
 0x111   : > { %v3781_v41 = vpop.f32.mrf.mxu0  ;;  %v4165_v3 = vpop.f32.mrf.mxu1 }
 0x112   : > { %v5060_v45 = vadd.f32 %v4165_v3, %v3765_v9 }
 0x113   : > { %v3782_v49 = vpop.f32.mrf.mxu0  ;;  %v1044_v30 = vpop.f32.mrf.mxu1 }
 0x114   : > { %v3783_v23 = vadd.f32 %v3782_v49, %v3781_v41  ;;  %v5064_v50 = vadd.f32 %v5013_v0, %v1044_v30  ;;  %v4504_v0 = vld [vmem:[%s4629_s26 + $0xb0] ss:$12 sps:$4 sm:$0xff]   ;;  %v4509_v49 = vld [vmem:[%s4629_s26 + $0x128] ss:$12 sps:$4 sm:$0xff]  }
 0x115   : > { %v3784_v33 = vpop.f32.mrf.mxu0  ;;  %v4168_v53 = vpop.f32.mrf.mxu1  ;;  %2685 = vmatmul.mubr.bf16.gmra.mxu0 %v4864_v36  ;;  %4263 = vmatmul.mubr.bf16.gmra.mxu1 %v4502_v43  ;;  %v4508_v43 = vld [vmem:[%s4629_s26 + $0x110] ss:$12 sps:$4 sm:$0xff]  }
 0x116   : > { %v5067_v26 = vadd.f32 %v4168_v53, %v3774_v13  ;;  %2692 = vmatprep.mubr.bf16.mxu0 %v4977_v24  ;;  %4266 = vmatprep.mubr.bf16.mxu1 %v4503_v46 }
 0x117   : > { %v3785_v54 = vpop.f32.mrf.mxu0  ;;  %v1057_v9 = vpop.f32.mrf.mxu1 }
 0x118   : > { %v3786_v57 = vadd.f32 %v3785_v54, %v3784_v33  ;;  %v5070_v12 = vadd.f32 %v3768_v61, %v1057_v9 }
 0x119   : > { %v3787_v58 = vpop.f32.mrf.mxu0  ;;  %v4169_v60 = vpop.f32.mrf.mxu1 }
 0x11a   : > { %v5073_v63 = vadd.f32 %v4169_v60, %v3777_v44 }
 0x11b   : > { %v3788_v4 = vpop.f32.mrf.mxu0  ;;  %v1060_v5 = vpop.f32.mrf.mxu1 }
 0x11c   : > { %v3789_v36 = vadd.f32 %v3788_v4, %v3787_v58  ;;  %v5076_v6 = vadd.f32 %v3771_v7, %v1060_v5  ;;  %v4506_v7 = vld [vmem:[%s4629_s26 + $0xe0] ss:$12 sps:$4 sm:$0xff]   ;;  %v4511_v5 = vld [vmem:[%s4629_s26 + $0x158] ss:$12 sps:$4 sm:$0xff]  }
 0x11d   : > { %v3790_v24 = vpop.f32.mrf.mxu0  ;;  %v4172_v8 = vpop.f32.mrf.mxu1  ;;  %2693 = vmatmul.mubr.bf16.gmra.mxu0 %v4984_v31  ;;  %4267 = vmatmul.mubr.bf16.gmra.mxu1 %v4504_v0 }
 0x11e   : > { %v5079_v61 = vadd.f32 %v4172_v8, %v3786_v57  ;;  %2700 = vmatprep.mubr.bf16.mxu0 %v4987_v34  ;;  %4270 = vmatprep.mubr.bf16.mxu1 %v4505_v1  ;;  %v4510_v1 = vld [vmem:[%s4629_s26 + $0x140] ss:$12 sps:$4 sm:$0xff]  }
 0x11f   : > { %v3791_v10 = vpop.f32.mrf.mxu0  ;;  %v1073_v22 = vpop.f32.mrf.mxu1 }
 0x120   : > { %v3792_v11 = vadd.f32 %v3791_v10, %v3790_v24  ;;  %v5082_v13 = vadd.f32 %v3780_v32, %v1073_v22 }
 0x121   : > { %v3793_v15 = vpop.f32.mrf.mxu0  ;;  %v4173_v16 = vpop.f32.mrf.mxu1 }
 0x122   : > { %v5085_v17 = vadd.f32 %v4173_v16, %v3789_v36 }
 0x123   : > { %v3794_v20 = vpop.f32.mrf.mxu0  ;;  %v1076_v31 = vpop.f32.mrf.mxu1 }
 0x124   : > { %v3795_v21 = vadd.f32 %v3794_v20, %v3793_v15  ;;  %v5088_v44 = vadd.f32 %v3783_v23, %v1076_v31  ;;  %v4515_v31 = vld [vmem:[%s4629_s26 + $0x19c] ss:$12 sps:$4 sm:$0xff]  }
 0x125   : > { %v3796_v34 = vpop.f32.mrf.mxu0  ;;  %v4176_v25 = vpop.f32.mrf.mxu1  ;;  %2701 = vmatmul.mubr.bf16.gmra.mxu0 %v4994_v38  ;;  %4271 = vmatmul.mubr.bf16.gmra.mxu1 %v4506_v7 }
 0x126   : > { %2708 = vmatprep.mubr.bf16.mxu0 %v4997_v40  ;;  %4274 = vmatprep.mubr.bf16.mxu1 %v4507_v19  ;;  %v4512_v19 = vld [vmem:[%s4629_s26 + $0x170] ss:$12 sps:$4 sm:$0xff]  }
 0x127   : > { %v3797_v52 = vpop.f32.mrf.mxu0  ;;  %v1089_v56 = vpop.f32.mrf.mxu1 }
 0x128   : > { %v3798_v29 = vadd.f32 %v3797_v52, %v3796_v34  ;;  %v5092_v32 = vadd.f32 %v3792_v11, %v1089_v56 }
 0x129   : > { %v3799_v41 = vpop.f32.mrf.mxu0  ;;  %v4177_v3 = vpop.f32.mrf.mxu1 }
 0x12a   : > { %v5095_v46 = vadd.f32 %v4176_v25, %v3798_v29 }
 0x12b   : > { %v3800_v30 = vpop.f32.mrf.mxu0  ;;  %v1092_v23 = vpop.f32.mrf.mxu1 }
 0x12c   : > { %v3801_v33 = vadd.f32 %v3800_v30, %v3799_v41  ;;  %v5098_v38 = vadd.f32 %v3795_v21, %v1092_v23  ;;  %v4516_v21 = vld [vmem:[%s4629_s26 + $0x188] ss:$12 sps:$4 sm:$0xff]  }
 0x12d   : > { %v3802_v40 = vpop.f32.mrf.mxu0  ;;  %v4180_v53 = vpop.f32.mrf.mxu1  ;;  %2709 = vmatmul.mubr.bf16.gmra.mxu0 %v5008_v35  ;;  %4275 = vmatmul.mubr.bf16.gmra.mxu1 %v4508_v43 }
 0x12e   : > { %v5101_v54 = vadd.f32 %v4177_v3, %v3801_v33  ;;  %2716 = vmatprep.mubr.bf16.mxu0 %v5011_v37  ;;  %4278 = vmatprep.mubr.bf16.mxu1 %v4509_v49  ;;  %v4513_v33 = vld [vmem:[%s4629_s26 + $0x198] ss:$12 sps:$4 sm:$0xff]  }
 0x12f   : > { %v3803_v9 = vpop.f32.mrf.mxu0  ;;  %v1105_v57 = vpop.f32.mrf.mxu1 }
 0x130   : > { %v3804_v58 = vadd.f32 %v3803_v9, %v3802_v40  ;;  %v4517_v40 = vld [vmem:[%s4629_s26 + $0x1a0] ss:$12 sps:$4 sm:$0xff]  }
 0x131   : > { %v3805_v60 = vpop.f32.mrf.mxu0  ;;  %v4181_v0 = vpop.f32.mrf.mxu1 }
 0x132   : > { %v5105_v4 = vadd.f32 %v3804_v58, %v1105_v57 }
 0x133   : > { %v3806_v36 = vpop.f32.mrf.mxu0  ;;  %v1108_v24 = vpop.f32.mrf.mxu1 }
 0x134   : > { %v3807_v35 = vadd.f32 %v3806_v36, %v3805_v60 }
 0x135   : > { %v3808_v8 = vpop.f32.mrf.mxu0  ;;  %v4184_v10 = vpop.f32.mrf.mxu1  ;;  %2717 = vmatmul.mubr.bf16.gmra.mxu0 %v5024_v28  ;;  %4279 = vmatmul.mubr.bf16.gmra.mxu1 %v4510_v1 }
 0x136   : > { %v5109_v37 = vadd.f32 %v3807_v35, %v1108_v24  ;;  %2724 = vmatprep.mubr.bf16.mxu0 %v5027_v51  ;;  %4282 = vmatprep.mubr.bf16.mxu1 %v4511_v5 }
 0x137   : > { %v3809_v22 = vpop.f32.mrf.mxu0  ;;  %v1121_v11 = vpop.f32.mrf.mxu1 }
 0x138   : > { %v3810_v15 = vadd.f32 %v3809_v22, %v3808_v8 }
 0x139   : > { %v3811_v16 = vpop.f32.mrf.mxu0  ;;  %v4185_v7 = vpop.f32.mrf.mxu1 }
 0x13a   : > { %v5113_v20 = vadd.f32 %v4180_v53, %v3810_v15 }
 0x13b   : > { %v3812_v34 = vpop.f32.mrf.mxu0  ;;  %v1124_v25 = vpop.f32.mrf.mxu1 }
 0x13c   : > { %v3813_v28 = vadd.f32 %v3812_v34, %v3811_v16 }
 0x13d   : > { %v3814_v52 = vpop.f32.mrf.mxu0  ;;  %v4188_v56 = vpop.f32.mrf.mxu1  ;;  %2725 = vmatmul.mubr.bf16.gmra.mxu0 %v5038_v2  ;;  %4283 = vmatmul.mubr.bf16.gmra.mxu1 %v4512_v19 }
 0x13e   : > { %v5118_v51 = vadd.f32 %v4181_v0, %v3813_v28  ;;  %v5121_v29 = vadd.f32 %v4188_v56, %v5021_v48  ;;  %2732 = vmatprep.mubr.bf16.mxu0 %v4515_v31  ;;  %4286 = vmatprep.mubr.bf16.mxu1 %v4516_v21 }
 0x13f   : > { %v3815_v41 = vpop.f32.mrf.mxu0  ;;  %v1137_v3 = vpop.f32.mrf.mxu1 }
 0x140   : > { %v3816_v43 = vadd.f32 %v3815_v41, %v3814_v52  ;;  %v5124_v49 = vadd.f32 %v5005_v59, %v1137_v3 }
 0x141   : > { %v3817_v30 = vpop.f32.mrf.mxu0  ;;  %v4189_v23 = vpop.f32.mrf.mxu1 }
 0x142   : > { %v5128_v53 = vadd.f32 %v3816_v43, %v1121_v11  ;;  %v5131_v2 = vadd.f32 %v4189_v23, %v5029_v55  ;;  %v5150_v11 = vld [vmem:[%s5852_s3] ss:$0 sm:$0xff] }
 0x143   : > { %v3818_v9 = vpop.f32.mrf.mxu0  ;;  %v1140_v48 = vpop.f32.mrf.mxu1  ;;  %v1168_v56 = vadd.f32 %v5150_v11, %v5057_v39  ;;  %v1170_v39 = vadd.f32 %v5150_v11, %v5053_v27  ;;  %v1172_v27 = vadd.f32 %v5150_v11, %v5070_v12 }
 0x144   : > { %v3819_v57 = vadd.f32 %v3818_v9, %v3817_v30  ;;  %v5134_v58 = vadd.f32 %v5015_v42, %v1140_v48 }
 0x145   : > { %v3820_v60 = vpop.f32.mrf.mxu0  ;;  %v4192_v0 = vpop.f32.mrf.mxu1  ;;  %2733 = vmatmul.mubr.bf16.gmra.mxu0 %v4513_v33  ;;  %4287 = vmatmul.mubr.bf16.gmra.mxu1 %v4517_v40 }
 0x146   : > { %v5136_v59 = vadd.f32 %v3819_v57, %v1124_v25  ;;  %v5139_v1 = vadd.f32 %v4192_v0, %v5046_v14 }
 0x147   : > { %v3821_v5 = vpop.f32.mrf.mxu0  ;;  %v1153_v36 = vpop.f32.mrf.mxu1 }
 0x148   : > { %v3822_v24 = vadd.f32 %v3821_v5, %v3820_v60  ;;  %v5142_v55 = vadd.f32 %v5035_v62, %v1153_v36 }
 0x149   : > { %v3823_v35 = vpop.f32.mrf.mxu0  ;;  %v4193_v8 = vpop.f32.mrf.mxu1 }
 0x14a   : > { %v5144_v22 = vadd.f32 %v4184_v10, %v3822_v24  ;;  %v1165_v42 = vadd.f32 %v4193_v8, %v5050_v47 }
 0x14b   : > { %v3824_v15 = vpop.f32.mrf.mxu0  ;;  %v1156_v14 = vpop.f32.mrf.mxu1 }
 0x14c   : > { %v5153_v16 = vadd.f32 %v5150_v11, %v1165_v42  ;;  %v3825_v19 = vadd.f32 %v3824_v15, %v3823_v35  ;;  %v5156_v62 = vadd.f32 %v5041_v18, %v1156_v14 }
 0x14d   : > { %v3890_v31 = vpop.f32.mrf.mxu1  ;;  %v4212_v21 = vpop.f32.mrf.mxu0 }
 0x14e   : > { %v5158_v10 = vadd.f32 %v4185_v7, %v3825_v19  ;;  %v1169_v7 = vadd.f32 %v5150_v11, %v5064_v50  ;;  %v1171_v50 = vadd.f32 %v5150_v11, %v5060_v45  ;;  %v1173_v45 = vadd.f32 %v5150_v11, %v5076_v6 }
 0x14f   : > { %v3891_v34 = vpop.f32.mrf.mxu1  ;;  %v1908_v47 = vpop.f32.mrf.mxu0 }
 0x150   : > { %v3892_v25 = vadd.f32 %v3891_v34, %v3890_v31 }
 0x151   : > { %v3893_v28 = vpop.f32.mrf.mxu1  ;;  %v4213_v52 = vpop.f32.mrf.mxu0 }
 0x152   : > { %v1909_v41 = vadd.f32 %v3892_v25, %v1908_v47 }
 0x153   : > { %v3894_v3 = vpop.f32.mrf.mxu1  ;;  %v1911_v43 = vpop.f32.mrf.mxu0 }
 0x154   : > { %v5162_v30 = vadd.f32 %v1909_v41, %v1168_v56  ;;  %v3895_v23 = vadd.f32 %v3894_v3, %v3893_v28 }
 0x155   : > { %v3896_v18 = vpop.f32.mrf.mxu1  ;;  %v4216_v33 = vpop.f32.mrf.mxu0 }
 0x156   : > { %v1912_v40 = vadd.f32 %v3895_v23, %v1911_v43 }
 0x157   : > { %v3897_v9 = vpop.f32.mrf.mxu1  ;;  %v1924_v48 = vpop.f32.mrf.mxu0 }
 0x158   : > { %v5166_v57 = vadd.f32 %v1912_v40, %v1169_v7  ;;  %v3898_v60 = vadd.f32 %v3897_v9, %v3896_v18 }
 0x159   : > { %v3899_v0 = vpop.f32.mrf.mxu1  ;;  %v4217_v5 = vpop.f32.mrf.mxu0 }
 0x15a   : > { %v1917_v36 = vadd.f32 %v4212_v21, %v3898_v60 }
 0x15b   : > { %v3900_v24 = vpop.f32.mrf.mxu1  ;;  %v1927_v35 = vpop.f32.mrf.mxu0 }
 0x15c   : > { %v3901_v8 = vadd.f32 %v3900_v24, %v3899_v0  ;;  %v5170_v42 = vadd.f32 %v1917_v36, %v1170_v39 }
 0x15d   : > { %v3902_v15 = vpop.f32.mrf.mxu1  ;;  %v4220_v14 = vpop.f32.mrf.mxu0 }
 0x15e   : > { %v1920_v19 = vadd.f32 %v4213_v52, %v3901_v8 }
 0x15f   : > { %v3903_v31 = vpop.f32.mrf.mxu1  ;;  %v1940_v34 = vpop.f32.mrf.mxu0 }
 0x160   : > { %v3904_v47 = vadd.f32 %v3903_v31, %v3902_v15  ;;  %v5174_v25 = vadd.f32 %v1920_v19, %v1171_v50 }
 0x161   : > { %v3905_v28 = vpop.f32.mrf.mxu1  ;;  %v4221_v56 = vpop.f32.mrf.mxu0 }
 0x162   : > { %v1925_v21 = vadd.f32 %v3904_v47, %v1924_v48  ;;  %v1174_v48 = vadd.f32 %v5150_v11, %v5067_v26 }
 0x163   : > { %v3906_v41 = vpop.f32.mrf.mxu1  ;;  %v1943_v3 = vpop.f32.mrf.mxu0 }
 0x164   : > { %v3907_v43 = vadd.f32 %v3906_v41, %v3905_v28  ;;  %v5178_v23 = vadd.f32 %v1925_v21, %v1172_v27  ;;  %v1176_v41 = vadd.f32 %v5150_v11, %v5082_v13 }
 0x165   : > { %v3908_v18 = vpop.f32.mrf.mxu1  ;;  %v5180_v7 = vpop.f32.mrf.mxu0 }
 0x166   : > { %v1928_v52 = vadd.f32 %v3907_v43, %v1927_v35  ;;  %v1175_v35 = vadd.f32 %v5150_v11, %v5073_v63 }
 0x167   : > { %v3909_v40 = vpop.f32.mrf.mxu1  ;;  %v1956_v9 = vpop.f32.mrf.mxu0 }
 0x168   : > { %v3910_v60 = vadd.f32 %v3909_v40, %v3908_v18  ;;  %v5184_v0 = vadd.f32 %v1928_v52, %v1173_v45 }
 0x169   : > { %v3911_v39 = vpop.f32.mrf.mxu1  ;;  %v5186_v12 = vpop.f32.mrf.mxu0 }
 0x16a   : > { %v1933_v36 = vadd.f32 %v4216_v33, %v3910_v60  ;;  %v1177_v60 = vadd.f32 %v5150_v11, %v5088_v44 }
 0x16b   : > { %v3912_v24 = vpop.f32.mrf.mxu1  ;;  %v1959_v8 = vpop.f32.mrf.mxu0 }
 0x16c   : > { %v3913_v15 = vadd.f32 %v3912_v24, %v3911_v39  ;;  %v5190_v50 = vadd.f32 %v1933_v36, %v1174_v48 }
 0x16d   : > { %v3914_v19 = vpop.f32.mrf.mxu1  ;;  %v5192_v6 = vpop.f32.mrf.mxu0 }
 0x16e   : > { %v1936_v31 = vadd.f32 %v4217_v5, %v3913_v15 }
 0x16f   : > { %v3915_v47 = vpop.f32.mrf.mxu1  ;;  %v5196_v28 = vpop.f32.mrf.mxu0 }
 0x170   : > { %v3916_v27 = vadd.f32 %v3915_v47, %v3914_v19  ;;  %v5198_v21 = vadd.f32 %v1936_v31, %v1175_v35  ;;  %v1178_v19 = vadd.f32 %v5150_v11, %v5079_v61 }
 0x171   : > { %v3917_v26 = vpop.f32.mrf.mxu1  ;;  %v5200_v33 = vpop.f32.mrf.mxu0 }
 0x172   : > { %v1941_v43 = vadd.f32 %v3916_v27, %v1940_v34 }
 0x173   : > { %v3918_v18 = vpop.f32.mrf.mxu1  ;;  %v5204_v45 = vpop.f32.mrf.mxu0 }
 0x174   : > { %v3919_v52 = vadd.f32 %v3918_v18, %v3917_v26  ;;  %v5206_v40 = vadd.f32 %v1941_v43, %v1176_v41  ;;  %v1179_v41 = vadd.f32 %v5150_v11, %v5085_v17 }
 0x175   : > { %v3920_v63 = vpop.f32.mrf.mxu1  ;;  %v5208_v5 = vpop.f32.mrf.mxu0 }
 0x176   : > { %v1944_v39 = vadd.f32 %v3919_v52, %v1943_v3 }
 0x177   : > { %v3921_v48 = vpop.f32.mrf.mxu1  ;;  %v5212_v36 = vpop.f32.mrf.mxu0 }
 0x178   : > { %v3922_v24 = vadd.f32 %v3921_v48, %v3920_v63  ;;  %v5214_v15 = vadd.f32 %v1944_v39, %v1177_v60  ;;  %v1180_v39 = vadd.f32 %v5150_v11, %v5092_v32 }
 0x179   : > { %v3923_v13 = vpop.f32.mrf.mxu1  ;;  %v5216_v34 = vpop.f32.mrf.mxu0 }
 0x17a   : > { %v1949_v35 = vadd.f32 %v4220_v14, %v3922_v24 }
 0x17b   : > { %v3924_v31 = vpop.f32.mrf.mxu1  ;;  %v5220_v47 = vpop.f32.mrf.mxu0 }
 0x17c   : > { %v3925_v27 = vadd.f32 %v3924_v31, %v3923_v13  ;;  %v5222_v26 = vadd.f32 %v1949_v35, %v1178_v19  ;;  %v1181_v31 = vadd.f32 %v5150_v11, %v5098_v38 }
 0x17d   : > { %v3926_v44 = vpop.f32.mrf.mxu1  ;;  %v5224_v3 = vpop.f32.mrf.mxu0 }
 0x17e   : > { %v1952_v43 = vadd.f32 %v4221_v56, %v3925_v27 }
 0x17f   : > { %v3927_v18 = vpop.f32.mrf.mxu1  ;;  %v5228_v52 = vpop.f32.mrf.mxu0 }
 0x180   : > { %v3928_v63 = vadd.f32 %v3927_v18, %v3926_v44  ;;  %v5230_v60 = vadd.f32 %v1952_v43, %v1179_v41 }
 0x181   : > { %v3929_v61 = vpop.f32.mrf.mxu1  ;;  %v5232_v14 = vpop.f32.mrf.mxu0 }
 0x182   : > { %v1957_v48 = vadd.f32 %v3928_v63, %v1956_v9  ;;  %v1182_v63 = vadd.f32 %v5150_v11, %v5095_v46 }
 0x183   : > { %v3930_v24 = vpop.f32.mrf.mxu1  ;;  %v5236_v13 = vpop.f32.mrf.mxu0 }
 0x184   : > { %v3931_v19 = vadd.f32 %v3930_v24, %v3929_v61  ;;  %v5238_v35 = vadd.f32 %v1957_v48, %v1180_v39 }
 0x185   : > { %v3932_v17 = vpop.f32.mrf.mxu1  ;;  %v5240_v56 = vpop.f32.mrf.mxu0 }
 0x186   : > { %5856 = vst [vmem:[#allocation2_spill] sm:$0xff] %v5238_v35  ;;  %v1960_v27 = vadd.f32 %v3931_v19, %v1959_v8 }
 0x187   : > { %v3933_v44 = vpop.f32.mrf.mxu1  ;;  %v5244_v41 = vpop.f32.mrf.mxu0 }
 0x188   : > { %v3934_v43 = vadd.f32 %v3933_v44, %v3932_v17  ;;  %v5246_v18 = vadd.f32 %v1960_v27, %v1181_v31  ;;  %v1183_v17 = vadd.f32 %v5150_v11, %v5101_v54 }
 0x189   : > { %v3935_v32 = vpop.f32.mrf.mxu1  ;;  %v5248_v9 = vpop.f32.mrf.mxu0 }
 0x18a   : > { %5857 = vst [vmem:[#allocation3_spill] sm:$0xff] %v5246_v18  ;;  %v1965_v61 = vadd.f32 %v5180_v7, %v3934_v43 }
 0x18b   : > { %v3936_v39 = vpop.f32.mrf.mxu1  ;;  %v5253_v48 = vpop.f32.mrf.mxu0 }
 0x18c   : > { %v3937_v24 = vadd.f32 %v3936_v39, %v3935_v32  ;;  %v5255_v38 = vadd.f32 %v1965_v61, %v1182_v63  ;;  %v1184_v32 = vadd.f32 %v5150_v11, %v5105_v4 }
 0x18d   : > { %v3938_v8 = vpop.f32.mrf.mxu1  ;;  %v5257_v19 = vpop.f32.mrf.mxu0 }
 0x18e   : > { %v1968_v31 = vadd.f32 %v5186_v12, %v3937_v24 }
 0x18f   : > { %v3939_v27 = vpop.f32.mrf.mxu1  ;;  %v5262_v44 = vpop.f32.mrf.mxu0 }
 0x190   : > { %v3940_v46 = vadd.f32 %v3939_v27, %v3938_v8  ;;  %v5264_v18 = vadd.f32 %v1968_v31, %v1183_v17  ;;  %v1185_v8 = vadd.f32 %v5150_v11, %v5109_v37 }
 0x191   : > { %v3941_v7 = vpop.f32.mrf.mxu1  ;;  %v5266_v43 = vpop.f32.mrf.mxu0 }
 0x192   : > { %5858 = vst [vmem:[#allocation4_spill] sm:$0xff] %v5264_v18  ;;  %v1973_v63 = vadd.f32 %v3940_v46, %v5196_v28 }
 0x193   : > { %v3942_v61 = vpop.f32.mrf.mxu1  ;;  %v5271_v39 = vpop.f32.mrf.mxu0 }
 0x194   : > { %v3943_v54 = vadd.f32 %v3942_v61, %v3941_v7  ;;  %v5273_v35 = vadd.f32 %v1973_v63, %v1184_v32  ;;  %v1186_v7 = vadd.f32 %v5150_v11, %v5113_v20 }
 0x195   : > { %v3944_v12 = vpop.f32.mrf.mxu1  ;;  %v5275_v24 = vpop.f32.mrf.mxu0 }
 0x196   : > { %5859 = vst [vmem:[#allocation5_spill] sm:$0xff] %v5273_v35  ;;  %v1976_v17 = vadd.f32 %v3943_v54, %v5204_v45 }
 0x197   : > { %v3945_v31 = vpop.f32.mrf.mxu1  ;;  %v5280_v27 = vpop.f32.mrf.mxu0 }
 0x198   : > { %v3946_v4 = vadd.f32 %v3945_v31, %v3944_v12  ;;  %v5282_v18 = vadd.f32 %v1976_v17, %v1185_v8  ;;  %v1187_v12 = vadd.f32 %v5150_v11, %v5118_v51 }
 0x199   : > { %v3947_v28 = vpop.f32.mrf.mxu1  ;;  %v5284_v46 = vpop.f32.mrf.mxu0 }
 0x19a   : > { %5860 = vst [vmem:[#allocation6_spill] sm:$0xff] %v5282_v18  ;;  %v1981_v32 = vadd.f32 %v5192_v6, %v3946_v4 }
 0x19b   : > { %v3948_v63 = vpop.f32.mrf.mxu1  ;;  %v5289_v61 = vpop.f32.mrf.mxu0 }
 0x19c   : > { %v3949_v37 = vadd.f32 %v3948_v63, %v3947_v28  ;;  %v5291_v35 = vadd.f32 %v1981_v32, %v1186_v7  ;;  %v1188_v28 = vadd.f32 %v5150_v11, %v5128_v53 }
 0x19d   : > { %v3950_v45 = vpop.f32.mrf.mxu1  ;;  %v5293_v54 = vpop.f32.mrf.mxu0 }
 0x19e   : > { %5861 = vst [vmem:[#allocation7_spill] sm:$0xff] %v5291_v35  ;;  %v1984_v8 = vadd.f32 %v5200_v33, %v3949_v37 }
 0x19f   : > { %v3951_v17 = vpop.f32.mrf.mxu1  ;;  %v5298_v31 = vpop.f32.mrf.mxu0 }
 0x1a0   : > { %v3952_v20 = vadd.f32 %v3951_v17, %v3950_v45  ;;  %v5300_v18 = vadd.f32 %v1984_v8, %v1187_v12  ;;  %v1189_v45 = vadd.f32 %v5150_v11, %v5136_v59 }
 0x1a1   : > { %v3953_v6 = vpop.f32.mrf.mxu1  ;;  %v5302_v4 = vpop.f32.mrf.mxu0 }
 0x1a2   : > { %5862 = vst [vmem:[#allocation8_spill] sm:$0xff] %v5300_v18  ;;  %v1989_v7 = vadd.f32 %v3952_v20, %v5212_v36 }
 0x1a3   : > { %v3954_v32 = vpop.f32.mrf.mxu1  ;;  %v5307_v63 = vpop.f32.mrf.mxu0 }
 0x1a4   : > { %v3955_v51 = vadd.f32 %v3954_v32, %v3953_v6  ;;  %v5309_v35 = vadd.f32 %v1989_v7, %v1188_v28  ;;  %v1190_v6 = vadd.f32 %v5150_v11, %v5144_v22 }
 0x1a5   : > { %v3956_v33 = vpop.f32.mrf.mxu1  ;;  %v5311_v37 = vpop.f32.mrf.mxu0 }
 0x1a6   : > { %5863 = vst [vmem:[#allocation9_spill] sm:$0xff] %v5309_v35  ;;  %v1992_v12 = vadd.f32 %v3955_v51, %v5220_v47 }
 0x1a7   : > { %v3957_v8 = vpop.f32.mrf.mxu1  ;;  %v5316_v17 = vpop.f32.mrf.mxu0 }
 0x1a8   : > { %v3958_v53 = vadd.f32 %v3957_v8, %v3956_v33  ;;  %v5318_v18 = vadd.f32 %v1992_v12, %v1189_v45  ;;  %v1191_v33 = vadd.f32 %v5150_v11, %v5158_v10 }
 0x1a9   : > { %v3959_v36 = vpop.f32.mrf.mxu1  ;;  %v5320_v20 = vpop.f32.mrf.mxu0 }
 0x1aa   : > { %5864 = vst [vmem:[#allocation10_spill] sm:$0xff] %v5318_v18  ;;  %v1997_v28 = vadd.f32 %v5208_v5, %v3958_v53 }
 0x1ab   : > { %v3960_v7 = vpop.f32.mrf.mxu1  ;;  %v5325_v32 = vpop.f32.mrf.mxu0 }
 0x1ac   : > { %v3961_v59 = vadd.f32 %v3960_v7, %v3959_v36  ;;  %v5327_v35 = vadd.f32 %v1997_v28, %v1190_v6  ;;  %v1192_v36 = vadd.f32 %v5150_v11, %v5124_v49 }
 0x1ad   : > { %v3962_v47 = vpop.f32.mrf.mxu1  ;;  %v5329_v51 = vpop.f32.mrf.mxu0 }
 0x1ae   : > { %5865 = vst [vmem:[#allocation11_spill] sm:$0xff] %v5327_v35  ;;  %v2000_v45 = vadd.f32 %v5216_v34, %v3961_v59 }
 0x1af   : > { %v3963_v12 = vpop.f32.mrf.mxu1  ;;  %v5334_v8 = vpop.f32.mrf.mxu0 }
 0x1b0   : > { %v3964_v22 = vadd.f32 %v3963_v12, %v3962_v47  ;;  %v5336_v18 = vadd.f32 %v2000_v45, %v1191_v33  ;;  %v1193_v47 = vadd.f32 %v5150_v11, %v5134_v58 }
 0x1b1   : > { %v3965_v5 = vpop.f32.mrf.mxu1  ;;  %v5338_v53 = vpop.f32.mrf.mxu0 }
 0x1b2   : > { %5866 = vst [vmem:[#allocation12_spill] sm:$0xff] %v5336_v18  ;;  %v2005_v6 = vadd.f32 %v3964_v22, %v5228_v52 }
 0x1b3   : > { %v3966_v28 = vpop.f32.mrf.mxu1  ;;  %v5343_v7 = vpop.f32.mrf.mxu0 }
 0x1b4   : > { %v3967_v10 = vadd.f32 %v3966_v28, %v3965_v5  ;;  %v5345_v35 = vadd.f32 %v2005_v6, %v1192_v36  ;;  %v1194_v5 = vadd.f32 %v5150_v11, %v5121_v29 }
 0x1b5   : > { %v3968_v34 = vpop.f32.mrf.mxu1  ;;  %v5347_v59 = vpop.f32.mrf.mxu0 }
 0x1b6   : > { %5867 = vst [vmem:[#allocation13_spill] sm:$0xff] %v5345_v35  ;;  %v2008_v33 = vadd.f32 %v3967_v10, %v5236_v13 }
 0x1b7   : > { %v3969_v45 = vpop.f32.mrf.mxu1  ;;  %v5352_v12 = vpop.f32.mrf.mxu0 }
 0x1b8   : > { %v3970_v49 = vadd.f32 %v3969_v45, %v3968_v34  ;;  %v5354_v18 = vadd.f32 %v2008_v33, %v1193_v47  ;;  %v1195_v34 = vadd.f32 %v5150_v11, %v5131_v2 }
 0x1b9   : > { %v3971_v52 = vpop.f32.mrf.mxu1  ;;  %v5356_v22 = vpop.f32.mrf.mxu0 }
 0x1ba   : > { %5868 = vst [vmem:[#allocation14_spill] sm:$0xff] %v5354_v18  ;;  %v2013_v36 = vadd.f32 %v5224_v3, %v3970_v49 }
 0x1bb   : > { %v3972_v6 = vpop.f32.mrf.mxu1  ;;  %v5361_v28 = vpop.f32.mrf.mxu0 }
 0x1bc   : > { %v3973_v58 = vadd.f32 %v3972_v6, %v3971_v52  ;;  %v5363_v35 = vadd.f32 %v2013_v36, %v1194_v5  ;;  %v1196_v52 = vadd.f32 %v5150_v11, %v5142_v55 }
 0x1bd   : > { %v3974_v13 = vpop.f32.mrf.mxu1  ;;  %v5365_v10 = vpop.f32.mrf.mxu0 }
 0x1be   : > { %5869 = vst [vmem:[#allocation15_spill] sm:$0xff] %v5363_v35  ;;  %v2016_v47 = vadd.f32 %v5232_v14, %v3973_v58 }
 0x1bf   : > { %v3975_v33 = vpop.f32.mrf.mxu1  ;;  %v5370_v45 = vpop.f32.mrf.mxu0 }
 0x1c0   : > { %v3976_v29 = vadd.f32 %v3975_v33, %v3974_v13  ;;  %v5372_v18 = vadd.f32 %v2016_v47, %v1195_v34  ;;  %v1197_v13 = vadd.f32 %v5150_v11, %v5156_v62  ;;  %v4034_v62 = vadd.f32 %v5280_v27, %v5275_v24 }
 0x1c1   : > { %v3977_v3 = vpop.f32.mrf.mxu1  ;;  %v5374_v49 = vpop.f32.mrf.mxu0 }
 0x1c2   : > { %5870 = vst [vmem:[#allocation16_spill] sm:$0xff] %v5372_v18  ;;  %v2021_v5 = vadd.f32 %v3976_v29, %v5244_v41 }
 0x1c3   : > { %v3978_v36 = vpop.f32.mrf.mxu1  ;;  %v5379_v6 = vpop.f32.mrf.mxu0 }
 0x1c4   : > { %v3979_v2 = vadd.f32 %v3978_v36, %v3977_v3  ;;  %v5381_v35 = vadd.f32 %v2021_v5, %v1196_v52  ;;  %v1198_v3 = vadd.f32 %v5150_v11, %v5139_v1 }
 0x1c5   : > { %v3980_v14 = vpop.f32.mrf.mxu1  ;;  %v5383_v58 = vpop.f32.mrf.mxu0 }
 0x1c6   : > { %v2024_v34 = vadd.f32 %v3979_v2, %v5253_v48 }
 0x1c7   : > { %v3981_v47 = vpop.f32.mrf.mxu1  ;;  %v5388_v33 = vpop.f32.mrf.mxu0 }
 0x1c8   : > { %v3982_v55 = vadd.f32 %v3981_v47, %v3980_v14  ;;  %v5390_v18 = vadd.f32 %v2024_v34, %v1197_v13  ;;  %v4028_v34 = vadd.f32 %v5262_v44, %v5257_v19 }
 0x1c9   : > { %v3983_v41 = vpop.f32.mrf.mxu1  ;;  %v5392_v29 = vpop.f32.mrf.mxu0 }
 0x1ca   : > { %v2029_v52 = vadd.f32 %v5240_v56, %v3982_v55  ;;  %v4037_v55 = vadd.f32 %v5289_v61, %v5284_v46 }
 0x1cb   : > { %v3984_v5 = vpop.f32.mrf.mxu1  ;;  %v5397_v36 = vpop.f32.mrf.mxu0 }
 0x1cc   : > { %v5401_v48 = vadd.f32 %v2029_v52, %v1198_v3  ;;  %v3985_v2 = vadd.f32 %v3984_v5, %v3983_v41 }
 0x1cd   : > { %v5403_v14 = vpop.f32.mrf.mxu0  ;;  %v4260_v13 = vpop.f32.mrf.mxu1 }
 0x1ce   : > { %v2032_v47 = vadd.f32 %v5248_v9, %v3985_v2  ;;  %v2784_v1 = vadd.f32 %v4260_v13, %v4034_v62  ;;  %v4031_v9 = vadd.f32 %v5271_v39, %v5266_v43 }
 0x1cf   : > { %v5408_v11 = vpop.f32.mrf.mxu0  ;;  %v2775_v56 = vpop.f32.mrf.mxu1 }
 0x1d0   : > { %v5413_v24 = vadd.f32 %v2032_v47, %v5153_v16  ;;  %v2776_v27 = vadd.f32 %v4028_v34, %v2775_v56  ;;  %v5416_v41 = vadd.f32 %v2784_v1, %v5170_v42  ;;  %v4046_v42 = vadd.f32 %v5316_v17, %v5311_v37 }
 0x1d1   : > { %v5418_v3 = vpop.f32.mrf.mxu0  ;;  %v4261_v52 = vpop.f32.mrf.mxu1  ;;  %v4049_v37 = vadd.f32 %v5325_v32, %v5320_v20 }
 0x1d2   : > { %v2787_v19 = vadd.f32 %v4261_v52, %v4037_v55  ;;  %3144 = vrot.lane.b32.xlu1 %v5416_v41, %s4542_s16  ;;  %v5425_v44 = vadd.f32 %v2776_v27, %v5162_v30 }
 0x1d3   : > { %v5427_v16 = vpop.f32.mrf.mxu0  ;;  %v2778_v46 = vpop.f32.mrf.mxu1 }
 0x1d4   : > { %v5432_v61 = vadd.f32 %v2787_v19, %v5174_v25  ;;  %v2779_v5 = vadd.f32 %v4031_v9, %v2778_v46  ;;  %3140 = vrot.lane.b32.xlu0 %v5425_v44, %s4542_s16  ;;  %v4040_v25 = vadd.f32 %v5298_v31, %v5293_v54  ;;  %v4058_v54 = vadd.f32 %v5352_v12, %v5347_v59 }
 0x1d5   : > { %v5436_v43 = vpop.f32.mrf.mxu0  ;;  %v4264_v39 = vpop.f32.mrf.mxu1  ;;  %v4061_v12 = vadd.f32 %v5361_v28, %v5356_v22  ;;  %v4055_v46 = vadd.f32 %v5343_v7, %v5338_v53  ;;  %v4070_v22 = vadd.f32 %v5388_v33, %v5383_v58  ;;  %v4064_v58 = vadd.f32 %v5370_v45, %v5365_v10 }
 0x1d6   : > { %v5439_v62 = vadd.f32 %v2779_v5, %v5166_v57  ;;  %v2800_v30 = vadd.f32 %v4264_v39, %v4046_v42  ;;  %3146 = vrot.lane.b32.xlu1 %v5432_v61, %s4542_s16  ;;  %v4043_v57 = vadd.f32 %v5307_v63, %v5302_v4 }
 0x1d7   : > { %v4081_v2 = vpop.f32.mrf.mxu0  ;;  %v2791_v13 = vpop.f32.mrf.mxu1 }
 0x1d8   : > { %3142 = vrot.lane.b32.xlu0 %v5439_v62, %s4542_s16  ;;  %v5454_v47 = vadd.f32 %v2800_v30, %v5190_v50  ;;  %v2792_v1 = vadd.f32 %v4040_v25, %v2791_v13 }
 0x1d9   : > { %v5449_v17 = vpop.f32.mrf.mxu0  ;;  %v4265_v34 = vpop.f32.mrf.mxu1 }
 0x1da   : > { %v2803_v56 = vadd.f32 %v4265_v34, %v4049_v37  ;;  %v5466_v50 = vadd.f32 %v2792_v1, %v5178_v23  ;;  %v4067_v34 = vadd.f32 %v5379_v6, %v5374_v49 }
 0x1db   : > { %v4084_v55 = vpop.f32.mrf.mxu0  ;;  %v2794_v27 = vpop.f32.mrf.mxu1 }
 0x1dc   : > { %v5459_v31 = vadd.f32 %v2803_v56, %v5198_v21  ;;  %v2795_v20 = vadd.f32 %v4043_v57, %v2794_v27  ;;  %3152 = vrot.lane.b32.xlu0 %v5454_v47, %s4542_s16  ;;  %v4052_v21 = vadd.f32 %v5334_v8, %v5329_v51 }
 0x1dd   : > { %v5463_v32 = vpop.f32.mrf.mxu0  ;;  %v4268_v4 = vpop.f32.mrf.mxu1 }
 0x1de   : > { %v2816_v63 = vadd.f32 %v4268_v4, %v4058_v54  ;;  %3154 = vrot.lane.b32.xlu1 %v5459_v31, %s4542_s16  ;;  %v5477_v9 = vadd.f32 %v2795_v20, %v5184_v0 }
 0x1df   : > { %v5470_v52 = vpop.f32.mrf.mxu0  ;;  %v2807_v59 = vpop.f32.mrf.mxu1 }
 0x1e0   : > { %3148 = vrot.lane.b32.xlu0 %v5466_v50, %s4542_s16  ;;  %v5486_v42 = vadd.f32 %v2816_v63, %v5222_v26  ;;  %v2808_v5 = vadd.f32 %v4052_v21, %v2807_v59  ;;  %v5873_v59 = vld [vmem:[#allocation3_spill] sm:$0xff] }
 0x1e1   : > { %v5481_v23 = vpop.f32.mrf.mxu0  ;;  %v4269_v19 = vpop.f32.mrf.mxu1 }
 0x1e2   : > { %v2819_v51 = vadd.f32 %v4269_v19, %v4061_v12  ;;  %3150 = vrot.lane.b32.xlu1 %v5477_v9, %s4542_s16  ;;  %v5500_v7 = vadd.f32 %v2808_v5, %v5206_v40  ;;  %v5874_v5 = vld [vmem:[#allocation7_spill] sm:$0xff] }
 0x1e3   : > { %v5490_v8 = vpop.f32.mrf.mxu0  ;;  %v2810_v0 = vpop.f32.mrf.mxu1 }
 0x1e4   : > { %v5495_v28 = vadd.f32 %v2819_v51, %v5230_v60  ;;  %v2811_v39 = vadd.f32 %v4055_v46, %v2810_v0  ;;  %3160 = vrot.lane.b32.xlu0 %v5486_v42, %s4542_s16  ;;  %v4073_v60 = vadd.f32 %v5397_v36, %v5392_v29  ;;  %v5871_v29 = vld [vmem:[#allocation4_spill] sm:$0xff]  ;;  %v4079_v46 = vadd.f32 %v5427_v16, %v5418_v3  ;;  %v5876_v16 = vld [vmem:[#allocation5_spill] sm:$0xff] }
 0x1e5   : > { %v4092_v26 = vpop.f32.mrf.mxu0  ;;  %v4272_v53 = vpop.f32.mrf.mxu1 }
 0x1e6   : > { %v2832_v30 = vadd.f32 %v4272_v53, %v4070_v22  ;;  %3162 = vrot.lane.b32.xlu1 %v5495_v28, %s4542_s16  ;;  %v5509_v33 = vadd.f32 %v2811_v39, %v5214_v15  ;;  %v4082_v15 = vadd.f32 %v4081_v2, %v5436_v43  ;;  %v4076_v43 = vadd.f32 %v5408_v11, %v5403_v14 }
 0x1e7   : > { %v4093_v13 = vpop.f32.mrf.mxu0  ;;  %v2823_v25 = vpop.f32.mrf.mxu1  ;;  %v4085_v2 = vadd.f32 %v4084_v55, %v5449_v17  ;;  %v5875_v55 = vld [vmem:[#allocation8_spill] sm:$0xff] }
 0x1e8   : > { %3156 = vrot.lane.b32.xlu0 %v5500_v7, %s4542_s16  ;;  %v5516_v57 = vadd.f32 %v2832_v30, %v5255_v38  ;;  %v2824_v1 = vadd.f32 %v4064_v58, %v2823_v25  ;;  %v5872_v38 = vld [vmem:[#allocation2_spill] sm:$0xff]  ;;  %v4094_v17 = vadd.f32 %v4093_v13, %v4092_v26  ;;  %v4088_v26 = vadd.f32 %v5470_v52, %v5463_v32 }
 0x1e9   : > { %v4095_v40 = vpop.f32.mrf.mxu0  ;;  %v4273_v37 = vpop.f32.mrf.mxu1 }
 0x1ea   : > { %v2835_v56 = vadd.f32 %v4273_v37, %v4073_v60  ;;  %3158 = vrot.lane.b32.xlu1 %v5509_v33, %s4542_s16  ;;  %v5527_v54 = vadd.f32 %v2824_v1, %v5872_v38 }
 0x1eb   : > { %v4096_v10 = vpop.f32.mrf.mxu0  ;;  %v2826_v45 = vpop.f32.mrf.mxu1 }
 0x1ec   : > { %v5522_v36 = vadd.f32 %v2835_v56, %v5871_v29  ;;  %v2827_v27 = vadd.f32 %v4067_v34, %v2826_v45  ;;  %3168 = vrot.lane.b32.xlu0 %v5516_v57, %s4542_s16  ;;  %v4097_v13 = vadd.f32 %v4096_v10, %v4095_v40  ;;  %v5877_v34 = vld [vmem:[#allocation6_spill] sm:$0xff]  ;;  %v5878_v29 = vld [vmem:[#allocation11_spill] sm:$0xff]  ;;  %v5879_v10 = vld [vmem:[#allocation12_spill] sm:$0xff] }
 0x1ed   : > { %v4098_v49 = vpop.f32.mrf.mxu0  ;;  %v4276_v6 = vpop.f32.mrf.mxu1 }
 0x1ee   : > { %v2848_v20 = vadd.f32 %v4276_v6, %v4082_v15  ;;  %3170 = vrot.lane.b32.xlu1 %v5522_v36, %s4542_s16  ;;  %v5535_v21 = vadd.f32 %v2827_v27, %v5873_v59  ;;  %v4091_v15 = vadd.f32 %v5490_v8, %v5481_v23  ;;  %v5880_v8 = vld [vmem:[#allocation9_spill] sm:$0xff] }
 0x1ef   : > { %v4099_v4 = vpop.f32.mrf.mxu0  ;;  %v2839_v63 = vpop.f32.mrf.mxu1 }
 0x1f0   : > { %3164 = vrot.lane.b32.xlu0 %v5527_v54, %s4542_s16  ;;  %v5542_v51 = vadd.f32 %v2848_v20, %v5874_v5  ;;  %v2840_v0 = vadd.f32 %v4076_v43, %v2839_v63  ;;  %v4100_v5 = vadd.f32 %v4099_v4, %v4098_v49  ;;  %v5883_v4 = vld [vmem:[#allocation16_spill] sm:$0xff] }
 0x1f1   : > { %v4101_v12 = vpop.f32.mrf.mxu0  ;;  %v4277_v19 = vpop.f32.mrf.mxu1 }
 0x1f2   : > { %v2851_v22 = vadd.f32 %v4277_v19, %v4085_v2  ;;  %3166 = vrot.lane.b32.xlu1 %v5535_v21, %s4542_s16  ;;  %v5552_v25 = vadd.f32 %v2840_v0, %v5876_v16 }
 0x1f3   : > { %v4102_v14 = vpop.f32.mrf.mxu0  ;;  %v2842_v11 = vpop.f32.mrf.mxu1 }
 0x1f4   : > { %v5547_v39 = vadd.f32 %v2851_v22, %v5875_v55  ;;  %v2843_v53 = vadd.f32 %v4079_v46, %v2842_v11  ;;  %3176 = vrot.lane.b32.xlu0 %v5542_v51, %s4542_s16  ;;  %v5881_v22 = vld [vmem:[#allocation10_spill] sm:$0xff] }
 0x1f5   : > { %v4104_v30 = vpop.f32.mrf.mxu0  ;;  %v4280_v3 = vpop.f32.mrf.mxu1 }
 0x1f6   : > { %v2864_v58 = vadd.f32 %v4280_v3, %v4094_v17  ;;  %3178 = vrot.lane.b32.xlu1 %v5547_v39, %s4542_s16  ;;  %v5559_v1 = vadd.f32 %v2843_v53, %v5877_v34  ;;  %v4103_v53 = vadd.f32 %v4102_v14, %v4101_v12  ;;  %v5884_v14 = vld [vmem:[#allocation13_spill] sm:$0xff] }
 0x1f7   : > { %v4105_v60 = vpop.f32.mrf.mxu0  ;;  %v2855_v37 = vpop.f32.mrf.mxu1 }
 0x1f8   : > { %3172 = vrot.lane.b32.xlu0 %v5552_v25, %s4542_s16  ;;  %v5566_v27 = vadd.f32 %v2864_v58, %v5878_v29  ;;  %v2856_v6 = vadd.f32 %v4088_v26, %v2855_v37  ;;  %v4106_v40 = vadd.f32 %v4105_v60, %v4104_v30  ;;  %v5882_v30 = vld [vmem:[#allocation15_spill] sm:$0xff]  ;;  %v5885_v29 = vld [vmem:[#allocation14_spill] sm:$0xff] }
 0x1f9   : > { %v4107_v56 = vpop.f32.mrf.mxu0  ;;  %v4281_v45 = vpop.f32.mrf.mxu1 }
 0x1fa   : > { %v2867_v38 = vadd.f32 %v4281_v45, %v4097_v13  ;;  %3174 = vrot.lane.b32.xlu1 %v5559_v1, %s4542_s16  ;;  %v5576_v2 = vadd.f32 %v2856_v6, %v5880_v8 }
 0x1fb   : > { %v4108_v32 = vpop.f32.mrf.mxu0  ;;  %v2858_v52 = vpop.f32.mrf.mxu1 }
 0x1fc   : > { %v5571_v20 = vadd.f32 %v2867_v38, %v5879_v10  ;;  %v2859_v63 = vadd.f32 %v4091_v15, %v2858_v52  ;;  %3184 = vrot.lane.b32.xlu0 %v5566_v27, %s4542_s16  ;;  %v4109_v0 = vadd.f32 %v4108_v32, %v4107_v56 }
 0x1fd   : > { %v4110_v43 = vpop.f32.mrf.mxu0  ;;  %v4284_v23 = vpop.f32.mrf.mxu1 }
 0x1fe   : > { %v2880_v59 = vadd.f32 %v4284_v23, %v4106_v40  ;;  %3186 = vrot.lane.b32.xlu1 %v5571_v20, %s4542_s16  ;;  %v5581_v11 = vadd.f32 %v2859_v63, %v5881_v22 }
 0x1ff   : > { %v4111_v19 = vpop.f32.mrf.mxu0  ;;  %v2871_v46 = vpop.f32.mrf.mxu1 }
 0x200   : > { %3180 = vrot.lane.b32.xlu0 %v5576_v2, %s4542_s16  ;;  %v5586_v3 = vadd.f32 %v2880_v59, %v5882_v30  ;;  %v2872_v16 = vadd.f32 %v4100_v5, %v2871_v46  ;;  %v4112_v12 = vadd.f32 %v4111_v19, %v4110_v43  ;;  %v2935_v30 = vld [vmem:[%s5631_s20 + $0x8] sm:$0xff] }
 0x201   : > { %v4113_v17 = vpop.f32.mrf.mxu0  ;;  %v4285_v55 = vpop.f32.mrf.mxu1 }
 0x202   : > { %v2883_v58 = vadd.f32 %v4285_v55, %v4109_v0  ;;  %3182 = vrot.lane.b32.xlu1 %v5581_v11, %s4542_s16  ;;  %v5596_v56 = vadd.f32 %v2872_v16, %v5884_v14  ;;  %v2937_v55 = vld [vmem:[%s5631_s20 + $0x18] sm:$0xff]  ;;  %v3046_v16 = vadd.f32 1.0, %v5416_v41 }
 0x203   : > { %v4114_v60 = vpop.f32.mrf.mxu0  ;;  %v2874_v49 = vpop.f32.mrf.mxu1 }
 0x204   : > { %v5591_v37 = vadd.f32 %v2883_v58, %v5883_v4  ;;  %v2875_v26 = vadd.f32 %v4103_v53, %v2874_v49  ;;  %3192 = vrot.lane.b32.xlu0 %v5586_v3, %s4542_s16  ;;  %v4115_v10 = vadd.f32 %v4114_v60, %v4113_v17  ;;  %v5644_v17 = vld [vmem:[%s5854_s5] ss:$0 sm:$0xff]  ;;  %v3044_v49 = vadd.f32 1.0, %v5425_v44  ;;  %v2941_v44 = vld [vmem:[%s5631_s20 + $0x38] sm:$0xff] }
 0x205   : > { %v4116_v13 = vpop.f32.mrf.mxu0  ;;  %v4288_v34 = vpop.f32.mrf.mxu1 }
 0x206   : > { %3194 = vrot.lane.b32.xlu1 %v5591_v37, %s4542_s16  ;;  %v5601_v6 = vadd.f32 %v2875_v26, %v5885_v29 }
 0x207   : > { %v4117_v45 = vpop.f32.mrf.mxu0  ;;  %v2887_v15 = vpop.f32.mrf.mxu1 }
 0x208   : > { %v4118_v38 = vadd.f32 %v4117_v45, %v4116_v13  ;;  %v2888_v32 = vadd.f32 %v4112_v12, %v2887_v15  ;;  %3188 = vrot.lane.b32.xlu0 %v5596_v56, %s4542_s16  ;;  %v2940_v13 = vld [vmem:[%s5631_s20 + $0x30] sm:$0xff]  ;;  %v3047_v12 = vadd.f32 1.0, %v5432_v61 }
 0x209   : > { %v4119_v52 = vpop.f32.mrf.mxu0  ;;  %v4289_v40 = vpop.f32.mrf.mxu1 }
 0x20a   : > { %v2896_v63 = vadd.f32 %v4288_v34, %v4118_v38  ;;  %v5606_v43 = vadd.f32 %v2888_v32, %v5381_v35  ;;  %3190 = vrot.lane.b32.xlu1 %v5601_v6, %s4542_s16  ;;  %v3045_v38 = vadd.f32 1.0, %v5439_v62 }
 0x20b   : > { %v4120_v23 = vpop.f32.mrf.mxu0  ;;  %v2890_v8 = vpop.f32.mrf.mxu1 }
 0x20c   : > { %v4121_v59 = vadd.f32 %v4120_v23, %v4119_v52  ;;  %v2891_v19 = vadd.f32 %v4115_v10, %v2890_v8  ;;  %3196 = vrot.lane.b32.xlu0 %v5606_v43, %s4542_s16  ;;  %v5616_v0 = vadd.f32 %v2896_v63, %v5401_v48  ;;  %v2936_v48 = vld [vmem:[%s5631_s20 + $0x10] sm:$0xff]  ;;  %v2938_v52 = vld [vmem:[%s5631_s20 + $0x20] sm:$0xff] }
 0x20e   : > { %v2899_v46 = vadd.f32 %v4289_v40, %v4121_v59  ;;  %v5613_v5 = vadd.f32 %v2891_v19, %v5390_v18  ;;  %v5636_v18 = vld [vmem:[%s5853_s4] ss:$0 sm:$0xff]  ;;  %v2939_v59 = vld [vmem:[%s5631_s20 + $0x28] sm:$0xff] }
 0x20f   : > { %v2975_v22 = vsub.f32 %v2936_v48, %v5636_v18  ;;  %v2976_v60 = vsub.f32 %v2937_v55, %v5636_v18  ;;  %v2974_v26 = vsub.f32 %v2935_v30, %v5636_v18  ;;  %v2979_v41 = vsub.f32 %v2940_v13, %v5636_v18 }
 0x210   : > { %3198 = vrot.lane.b32.xlu1 %v5613_v5, %s4542_s16  ;;  %3200 = vrot.lane.b32.xlu0 %v5616_v0, %s4542_s16  ;;  %v5623_v35 = vadd.f32 %v2899_v46, %v5413_v24  ;;  %v2934_v24 = vld [vmem:[%s5631_s20] sm:$0xff]  ;;  %v2980_v63 = vsub.f32 %v2941_v44, %v5636_v18  ;;  %v3050_v46 = vadd.f32 1.0, %v5454_v47  ;;  %v2977_v48 = vsub.f32 %v2938_v52, %v5636_v18  ;;  %v2943_v44 = vld [vmem:[%s5631_s20 + $0x48] sm:$0xff] }
 0x211   : > { %v2973_v53 = vsub.f32 %v2934_v24, %v5636_v18  ;;  %v3014_v58 = vmul.f32 %v5644_v17, %v2975_v22  ;;  %v3015_v14 = vmul.f32 %v5644_v17, %v2976_v60  ;;  %v3013_v61 = vmul.f32 %v5644_v17, %v2974_v26  ;;  %v2944_v22 = vld [vmem:[%s5631_s20 + $0x50] sm:$0xff]  ;;  %v2942_v26 = vld [vmem:[%s5631_s20 + $0x40] sm:$0xff] }
 0x212   : > { %v3018_v8 = vmul.f32 %v5644_v17, %v2979_v41  ;;  %v3019_v30 = vmul.f32 %v5644_v17, %v2980_v63  ;;  %v3048_v47 = vadd.f32 1.0, %v5466_v50  ;;  %v2981_v50 = vsub.f32 %v2942_v26, %v5636_v18  ;;  %v2948_v52 = vld [vmem:[%s5631_s20 + $0x70] sm:$0xff] }
 0x213   : > { %v3012_v4 = vmul.f32 %v5644_v17, %v2973_v53  ;;  %v3078_v34 = vmul.f32 %v3046_v16, %v3014_v58  ;;  %v3079_v10 = vmul.f32 %v3047_v12, %v3015_v14  ;;  %v3077_v19 = vmul.f32 %v3045_v38, %v3013_v61  ;;  %v2945_v58 = vld [vmem:[%s5631_s20 + $0x58] sm:$0xff] }
 0x214   : > { %3202 = vrot.lane.b32.xlu1 %v5623_v35, %s4542_s16  ;;  %v3051_v53 = vadd.f32 1.0, %v5459_v31  ;;  %v2978_v16 = vsub.f32 %v2939_v59, %v5636_v18  ;;  %v3082_v60 = vmul.f32 %v3050_v46, %v3018_v8  ;;  %v2984_v31 = vsub.f32 %v2945_v58, %v5636_v18  ;;  %v2949_v8 = vld [vmem:[%s5631_s20 + $0x78] sm:$0xff] }
 0x215   : > { %v3076_v29 = vmul.f32 %v3044_v49, %v3012_v4  ;;  %v3016_v49 = vmul.f32 %v5644_v17, %v2977_v48  ;;  %v2983_v4 = vsub.f32 %v2944_v22, %v5636_v18  ;;  %v3049_v14 = vadd.f32 1.0, %v5477_v9 }
 0x216   : > { %v3083_v12 = vmul.f32 %v3051_v53, %v3019_v30  ;;  %v3054_v38 = vadd.f32 1.0, %v5486_v42  ;;  %v3023_v9 = vmul.f32 %v5644_v17, %v2984_v31  ;;  %v3055_v63 = vadd.f32 1.0, %v5495_v28  ;;  %v2952_v31 = vld [vmem:[%s5631_s20 + $0x90] sm:$0xff] }
 0x217   : > { %v3022_v61 = vmul.f32 %v5644_v17, %v2983_v4  ;;  %v3020_v42 = vmul.f32 %v5644_v17, %v2981_v50  ;;  %v3052_v46 = vadd.f32 1.0, %v5500_v7  ;;  %v2987_v48 = vsub.f32 %v2948_v52, %v5636_v18 }
 0x218   : > { %v2988_v28 = vsub.f32 %v2949_v8, %v5636_v18  ;;  %v3087_v53 = vmul.f32 %v3055_v63, %v3023_v9  ;;  %v3053_v30 = vadd.f32 1.0, %v5509_v33  ;;  %v3058_v4 = vadd.f32 1.0, %v5516_v57 }
 0x219   : > { %v3026_v26 = vmul.f32 %v5644_v17, %v2987_v48 }
 0x21a   : > { %v3027_v33 = vmul.f32 %v5644_v17, %v2988_v28 }
 0x244   : > { %v3145_v45 = vpop.permute.xlu1 %3144 }
 0x245   : > { %v3238_v15 = vadd.f32 %v3145_v45, %v3078_v34  ;;  %v3017_v45 = vmul.f32 %v5644_v17, %v2978_v16 }
 0x246   : > { %v3141_v32 = vpop.permute.xlu0 %3140 }
 0x247   : > { %3271 = vst.msk [vmem:[%s5661_s7 + $0x10] sm:$0xff] %vm3268_vm0, %v3238_v15  ;;  %v3236_v40 = vadd.f32 %v3141_v32, %v3076_v29  ;;  %v3080_v29 = vmul.f32 %v3048_v47, %v3016_v49  ;;  %v3084_v49 = vmul.f32 %v3052_v46, %v3020_v42  ;;  %v3062_v42 = vadd.f32 1.0, %v5542_v51  ;;  %v2956_v46 = vld [vmem:[%s5631_s20 + $0xb0] sm:$0xff] }
 0x248   : > { %v3147_v23 = vpop.permute.xlu1 %3146 }
 0x249   : > { %3269 = vst.msk [vmem:[%s5661_s7] sm:$0xff] %vm3268_vm0, %v3236_v40  ;;  %v3239_v62 = vadd.f32 %v3147_v23, %v3079_v10  ;;  %v3081_v10 = vmul.f32 %v3049_v14, %v3017_v45  ;;  %v2982_v23 = vsub.f32 %v2943_v44, %v5636_v18  ;;  %v3059_v14 = vadd.f32 1.0, %v5522_v36 }
 0x24a   : > { %v3143_v24 = vpop.permute.xlu0 %3142 }
 0x24b   : > { %3272 = vst.msk [vmem:[%s5661_s7 + $0x18] sm:$0xff] %vm3268_vm0, %v3239_v62  ;;  %v3237_v55 = vadd.f32 %v3143_v24, %v3077_v19  ;;  %v3086_v19 = vmul.f32 %v3054_v38, %v3022_v61  ;;  %v2946_v24 = vld [vmem:[%s5631_s20 + $0x60] sm:$0xff]  ;;  %v3021_v16 = vmul.f32 %v5644_v17, %v2982_v23  ;;  %v2991_v38 = vsub.f32 %v2952_v31, %v5636_v18  ;;  %v2951_v23 = vld [vmem:[%s5631_s20 + $0x88] sm:$0xff] }
 0x24c   : > { %v2985_v7 = vsub.f32 %v2946_v24, %v5636_v18  ;;  %v2950_v61 = vld [vmem:[%s5631_s20 + $0x80] sm:$0xff]  ;;  %v3091_v52 = vmul.f32 %v3059_v14, %v3027_v33  ;;  %v2990_v28 = vsub.f32 %v2951_v23, %v5636_v18  ;;  %v2955_v31 = vld [vmem:[%s5631_s20 + $0xa8] sm:$0xff]  ;;  %v3066_v14 = vadd.f32 1.0, %v5566_v27 }
 0x24d   : > { %3270 = vst.msk [vmem:[%s5661_s7 + $0x8] sm:$0xff] %vm3268_vm0, %v3237_v55  ;;  %v3065_v23 = vadd.f32 1.0, %v5581_v11 }
 0x24e   : > { %v3153_v13 = vpop.permute.xlu0 %3152  ;;  %v3024_v57 = vmul.f32 %v5644_v17, %v2985_v7  ;;  %v2995_v7 = vsub.f32 %v2956_v46, %v5636_v18 }
 0x24f   : > { %v3242_v34 = vadd.f32 %v3153_v13, %v3082_v60  ;;  %v2947_v60 = vld [vmem:[%s5631_s20 + $0x68] sm:$0xff] }
 0x250   : > { %v3155_v41 = vpop.permute.xlu1 %3154  ;;  %v2986_v45 = vsub.f32 %v2947_v60, %v5636_v18  ;;  %v2954_v60 = vld [vmem:[%s5631_s20 + $0xa0] sm:$0xff] }
 0x251   : > { %3275 = vst.msk [vmem:[%s5661_s7 + $0x30] sm:$0xff] %vm3268_vm0, %v3242_v34  ;;  %v3243_v15 = vadd.f32 %v3155_v41, %v3083_v12  ;;  %v3085_v12 = vmul.f32 %v3053_v30, %v3021_v16  ;;  %v2953_v41 = vld [vmem:[%s5631_s20 + $0x98] sm:$0xff] }
 0x252   : > { %v3149_v32 = vpop.permute.xlu0 %3148  ;;  %v2992_v36 = vsub.f32 %v2953_v41, %v5636_v18 }
 0x253   : > { %3276 = vst.msk [vmem:[%s5661_s7 + $0x38] sm:$0xff] %vm3268_vm0, %v3243_v15  ;;  %v3240_v40 = vadd.f32 %v3149_v32, %v3080_v29  ;;  %v3090_v15 = vmul.f32 %v3058_v4, %v3026_v26  ;;  %v3056_v29 = vadd.f32 1.0, %v5527_v54  ;;  %v2989_v54 = vsub.f32 %v2950_v61, %v5636_v18 }
 0x254   : > { %v3151_v59 = vpop.permute.xlu1 %3150  ;;  %v3061_v26 = vadd.f32 1.0, %v5559_v1 }
 0x255   : > { %3273 = vst.msk [vmem:[%s5661_s7 + $0x20] sm:$0xff] %vm3268_vm0, %v3240_v40  ;;  %v3241_v62 = vadd.f32 %v3151_v59, %v3081_v10  ;;  %v3057_v40 = vadd.f32 1.0, %v5535_v21  ;;  %v3025_v10 = vmul.f32 %v5644_v17, %v2986_v45  ;;  %v3088_v59 = vmul.f32 %v3056_v29, %v3024_v57 }
 0x256   : > { %v3161_v22 = vpop.permute.xlu0 %3160  ;;  %v3031_v21 = vmul.f32 %v5644_v17, %v2992_v36  ;;  %v3028_v51 = vmul.f32 %v5644_v17, %v2989_v54  ;;  %v3034_v45 = vmul.f32 %v5644_v17, %v2995_v7  ;;  %v2994_v29 = vsub.f32 %v2955_v31, %v5636_v18 }
 0x257   : > { %3274 = vst.msk [vmem:[%s5661_s7 + $0x28] sm:$0xff] %vm3268_vm0, %v3241_v62  ;;  %v3246_v55 = vadd.f32 %v3161_v22, %v3086_v19  ;;  %v3030_v62 = vmul.f32 %v5644_v17, %v2991_v38  ;;  %v3089_v24 = vmul.f32 %v3057_v40, %v3025_v10  ;;  %v3063_v22 = vadd.f32 1.0, %v5547_v39  ;;  %v2961_v38 = vld [vmem:[%s5631_s20 + $0xd8] sm:$0xff]  ;;  %v2958_v40 = vld [vmem:[%s5631_s20 + $0xc0] sm:$0xff] }
 0x258   : > { %v3163_v58 = vpop.permute.xlu1 %3162  ;;  %v3098_v36 = vmul.f32 %v3066_v14, %v3034_v45  ;;  %v2965_v14 = vld [vmem:[%s5631_s20 + $0xf8] sm:$0xff] }
 0x259   : > { %3279 = vst.msk [vmem:[%s5661_s7 + $0x50] sm:$0xff] %vm3268_vm0, %v3246_v55  ;;  %v3247_v47 = vadd.f32 %v3163_v58, %v3087_v53  ;;  %v2957_v55 = vld [vmem:[%s5631_s20 + $0xb8] sm:$0xff]  ;;  %v3094_v16 = vmul.f32 %v3062_v42, %v3030_v62  ;;  %v3060_v58 = vadd.f32 1.0, %v5552_v25  ;;  %v3095_v4 = vmul.f32 %v3063_v22, %v3031_v21 }
 0x25a   : > { %v3157_v13 = vpop.permute.xlu0 %3156  ;;  %v2996_v39 = vsub.f32 %v2957_v55, %v5636_v18  ;;  %v2993_v25 = vsub.f32 %v2954_v60, %v5636_v18  ;;  %v2997_v42 = vsub.f32 %v2958_v40, %v5636_v18  ;;  %v3070_v21 = vadd.f32 1.0, %v5586_v3  ;;  %v2963_v60 = vld [vmem:[%s5631_s20 + $0xe8] sm:$0xff] }
 0x25b   : > { %3280 = vst.msk [vmem:[%s5661_s7 + $0x58] sm:$0xff] %vm3268_vm0, %v3247_v47  ;;  %v3244_v34 = vadd.f32 %v3157_v13, %v3084_v49  ;;  %v3029_v13 = vmul.f32 %v5644_v17, %v2990_v28  ;;  %v3071_v55 = vadd.f32 1.0, %v5591_v37 }
 0x25c   : > { %v3159_v50 = vpop.permute.xlu1 %3158  ;;  %v3035_v1 = vmul.f32 %v5644_v17, %v2996_v39  ;;  %v3032_v27 = vmul.f32 %v5644_v17, %v2993_v25  ;;  %v3036_v3 = vmul.f32 %v5644_v17, %v2997_v42 }
 0x25d   : > { %3277 = vst.msk [vmem:[%s5661_s7 + $0x40] sm:$0xff] %vm3268_vm0, %v3244_v34  ;;  %v3245_v44 = vadd.f32 %v3159_v50, %v3085_v12  ;;  %v3092_v12 = vmul.f32 %v3060_v58, %v3028_v51  ;;  %v2960_v50 = vld [vmem:[%s5631_s20 + $0xd0] sm:$0xff]  ;;  %v3068_v58 = vadd.f32 1.0, %v5596_v56 }
 0x25e   : > { %v3169_v32 = vpop.permute.xlu0 %3168 }
 0x25f   : > { %3278 = vst.msk [vmem:[%s5661_s7 + $0x48] sm:$0xff] %vm3268_vm0, %v3245_v44  ;;  %v3250_v9 = vadd.f32 %v3169_v32, %v3090_v15  ;;  %v3093_v44 = vmul.f32 %v3061_v26, %v3029_v13  ;;  %v3067_v15 = vadd.f32 1.0, %v5571_v20  ;;  %v3000_v20 = vsub.f32 %v2961_v38, %v5636_v18 }
 0x260   : > { %v3171_v63 = vpop.permute.xlu1 %3170  ;;  %v3100_v31 = vmul.f32 %v3068_v58, %v3036_v3  ;;  %v3074_v38 = vadd.f32 1.0, %v5616_v0 }
 0x261   : > { %3283 = vst.msk [vmem:[%s5661_s7 + $0x70] sm:$0xff] %vm3268_vm0, %v3250_v9  ;;  %v3251_v8 = vadd.f32 %v3171_v63, %v3091_v52  ;;  %v3064_v9 = vadd.f32 1.0, %v5576_v2  ;;  %v2999_v52 = vsub.f32 %v2960_v50, %v5636_v18  ;;  %v3099_v54 = vmul.f32 %v3067_v15, %v3035_v1  ;;  %v2959_v2 = vld [vmem:[%s5631_s20 + $0xc8] sm:$0xff] }
 0x262   : > { %v3165_v19 = vpop.permute.xlu0 %3164  ;;  %v3039_v11 = vmul.f32 %v5644_v17, %v3000_v20 }
 0x263   : > { %3284 = vst.msk [vmem:[%s5661_s7 + $0x78] sm:$0xff] %vm3268_vm0, %v3251_v8  ;;  %v3248_v48 = vadd.f32 %v3165_v19, %v3088_v59  ;;  %v3033_v8 = vmul.f32 %v5644_v17, %v2994_v29  ;;  %v3096_v19 = vmul.f32 %v3064_v9, %v3032_v27  ;;  %v3038_v46 = vmul.f32 %v5644_v17, %v2999_v52 }
 0x264   : > { %v3167_v53 = vpop.permute.xlu1 %3166  ;;  %v3073_v29 = vadd.f32 1.0, %v5613_v5 }
 0x265   : > { %3281 = vst.msk [vmem:[%s5661_s7 + $0x60] sm:$0xff] %vm3268_vm0, %v3248_v48  ;;  %v3249_v30 = vadd.f32 %v3167_v53, %v3089_v24  ;;  %v2962_v24 = vld [vmem:[%s5631_s20 + $0xe0] sm:$0xff]  ;;  %v3097_v28 = vmul.f32 %v3065_v23, %v3033_v8  ;;  %v2998_v53 = vsub.f32 %v2959_v2, %v5636_v18 }
 0x266   : > { %v3177_v47 = vpop.permute.xlu0 %3176  ;;  %v3001_v7 = vsub.f32 %v2962_v24, %v5636_v18 }
 0x267   : > { %3282 = vst.msk [vmem:[%s5661_s7 + $0x68] sm:$0xff] %vm3268_vm0, %v3249_v30  ;;  %v3254_v49 = vadd.f32 %v3177_v47, %v3094_v16  ;;  %v3102_v16 = vmul.f32 %v3070_v21, %v3038_v46  ;;  %v2964_v47 = vld [vmem:[%s5631_s20 + $0xf0] sm:$0xff]  ;;  %v3037_v26 = vmul.f32 %v5644_v17, %v2998_v53 }
 0x268   : > { %v3179_v33 = vpop.permute.xlu1 %3178  ;;  %v3003_v56 = vsub.f32 %v2964_v47, %v5636_v18 }
 0x269   : > { %3287 = vst.msk [vmem:[%s5661_s7 + $0x90] sm:$0xff] %vm3268_vm0, %v3254_v49  ;;  %v3255_v34 = vadd.f32 %v3179_v33, %v3095_v4  ;;  %v3103_v49 = vmul.f32 %v3071_v55, %v3039_v11  ;;  %v3069_v4 = vadd.f32 1.0, %v5601_v6  ;;  %v3002_v33 = vsub.f32 %v2963_v60, %v5636_v18 }
 0x26a   : > { %v3173_v41 = vpop.permute.xlu0 %3172 }
 0x26b   : > { %3288 = vst.msk [vmem:[%s5661_s7 + $0x98] sm:$0xff] %vm3268_vm0, %v3255_v34  ;;  %v3252_v57 = vadd.f32 %v3173_v41, %v3092_v12  ;;  %v3072_v34 = vadd.f32 1.0, %v5606_v43  ;;  %v3040_v12 = vmul.f32 %v5644_v17, %v3001_v7  ;;  %v3101_v41 = vmul.f32 %v3069_v4, %v3037_v26 }
 0x26c   : > { %v3175_v61 = vpop.permute.xlu1 %3174  ;;  %v3041_v50 = vmul.f32 %v5644_v17, %v3002_v33 }
 0x26d   : > { %3285 = vst.msk [vmem:[%s5661_s7 + $0x80] sm:$0xff] %vm3268_vm0, %v3252_v57  ;;  %v3253_v32 = vadd.f32 %v3175_v61, %v3093_v44  ;;  %v3042_v57 = vmul.f32 %v5644_v17, %v3003_v56  ;;  %v3004_v44 = vsub.f32 %v2965_v14, %v5636_v18  ;;  %v3104_v15 = vmul.f32 %v3072_v34, %v3040_v12 }
 0x26e   : > { %v3185_v10 = vpop.permute.xlu0 %3184  ;;  %v3075_v18 = vadd.f32 1.0, %v5623_v35 }
 0x26f   : > { %3286 = vst.msk [vmem:[%s5661_s7 + $0x88] sm:$0xff] %vm3268_vm0, %v3253_v32  ;;  %v3258_v63 = vadd.f32 %v3185_v10, %v3098_v36  ;;  %v3105_v32 = vmul.f32 %v3073_v29, %v3041_v50  ;;  %v3106_v36 = vmul.f32 %v3074_v38, %v3042_v57  ;;  %v3043_v9 = vmul.f32 %v5644_v17, %v3004_v44 }
 0x270   : > { %v3187_v59 = vpop.permute.xlu1 %3186 }
 0x271   : > { %3291 = vst.msk [vmem:[%s5661_s7 + $0xb0] sm:$0xff] %vm3268_vm0, %v3258_v63  ;;  %v3259_v62 = vadd.f32 %v3187_v59, %v3099_v54  ;;  %v3107_v5 = vmul.f32 %v3075_v18, %v3043_v9 }
 0x272   : > { %v3181_v48 = vpop.permute.xlu0 %3180 }
 0x273   : > { %3292 = vst.msk [vmem:[%s5661_s7 + $0xb8] sm:$0xff] %vm3268_vm0, %v3259_v62  ;;  %v3256_v22 = vadd.f32 %v3181_v48, %v3096_v19 }
 0x274   : > { %v3183_v51 = vpop.permute.xlu1 %3182 }
 0x275   : > { %3289 = vst.msk [vmem:[%s5661_s7 + $0xa0] sm:$0xff] %vm3268_vm0, %v3256_v22  ;;  %v3257_v30 = vadd.f32 %v3183_v51, %v3097_v28 }
 0x276   : > { %v3193_v39 = vpop.permute.xlu0 %3192 }
 0x277   : > { %3290 = vst.msk [vmem:[%s5661_s7 + $0xa8] sm:$0xff] %vm3268_vm0, %v3257_v30  ;;  %v3262_v37 = vadd.f32 %v3193_v39, %v3102_v16 }
 0x278   : > { %v3195_v13 = vpop.permute.xlu1 %3194 }
 0x279   : > { %3295 = vst.msk [vmem:[%s5661_s7 + $0xd0] sm:$0xff] %vm3268_vm0, %v3262_v37  ;;  %v3263_v25 = vadd.f32 %v3195_v13, %v3103_v49 }
 0x27a   : > { %v3189_v45 = vpop.permute.xlu0 %3188 }
 0x27b   : > { %3296 = vst.msk [vmem:[%s5661_s7 + $0xd8] sm:$0xff] %vm3268_vm0, %v3263_v25  ;;  %v3260_v6 = vadd.f32 %v3189_v45, %v3100_v31 }
 0x27c   : > { %v3191_v1 = vpop.permute.xlu1 %3190 }
 0x27d   : > { %3293 = vst.msk [vmem:[%s5661_s7 + $0xc0] sm:$0xff] %vm3268_vm0, %v3260_v6  ;;  %v3261_v43 = vadd.f32 %v3191_v1, %v3101_v41 }
 0x27e   : > { %v3197_v61 = vpop.permute.xlu0 %3196 }
 0x27f   : > { %3294 = vst.msk [vmem:[%s5661_s7 + $0xc8] sm:$0xff] %vm3268_vm0, %v3261_v43  ;;  %v3264_v27 = vadd.f32 %v3197_v61, %v3104_v15 }
 0x281   : > { %3297 = vst.msk [vmem:[%s5661_s7 + $0xe0] sm:$0xff] %vm3268_vm0, %v3264_v27 }
 0x282   : > { %v3199_v52 = vpop.permute.xlu1 %3198  ;;  %v3201_v40 = vpop.permute.xlu0 %3200 }
 0x283   : > { %v3265_v10 = vadd.f32 %v3199_v52, %v3105_v32  ;;  %v3266_v20 = vadd.f32 %v3201_v40, %v3106_v36 }
 0x285   : > { %3298 = vst.msk [vmem:[%s5661_s7 + $0xe8] sm:$0xff] %vm3268_vm0, %v3265_v10  ;;  %3299 = vst.msk [vmem:[%s5661_s7 + $0xf0] sm:$0xff] %vm3268_vm0, %v3266_v20 }
 0x286   : > { %v3203_v0 = vpop.permute.xlu1 %3202 }
 0x287   : > { %v3267_v63 = vadd.f32 %v3203_v0, %v3107_v5 }
 0x289   : > { %3300 = vst.msk [vmem:[%s5661_s7 + $0xf8] sm:$0xff] %vm3268_vm0, %v3267_v63 }
 0x28a PF: > { %s16_s23 = sadd.s32 1, %s4540_s23   ;;  %s5886_s21 = smov %s4536_s22 }
 0x28b   : > { %p13_p5 = scmp.ge.s32.totalorder %s16_s23, 4   ;;  %s5887_s22 = smov %s5889_s24 }
 0x28d   :  { %15 = sbr.rel (!%p13_p5) target bundleno = 2 (0x2), region = 79 }

</bundles_post_ra>
